<compile_context>
chip_gen: v7x
topology: tpu7x:2x2x1
jax: 0.10.0
libtpu: 0.0.40
codegen_flags: <defaults>
</compile_context>

<pallas_src>
import functools

import numpy as np
import jax
import jax.numpy as jnp
from jax import lax
from jax.experimental import pallas as pl
from jax.experimental.pallas import tpu as pltpu

_NEG_FILL = -1e4                       # exp()->0 and softplus()->0 exactly in f32;
                                       # representable in fp16/bf16 (unlike -1e9).
_VMEM_INPUT_BUDGET = 16 * 1024 * 1024  # double-buffered input footprint target
_CHUNK = 32                            # sublanes (4 vregs deep) per inner iteration


def _cdiv(a, b):
    return -(-a // b)


def _contribs(x, t):
    """Per-element contributions; x, t are float32 arrays of identical shape."""
    e = jnp.exp(-jnp.abs(x))
    sp = jnp.maximum(x, 0.0) + jnp.log(1.0 + e)   # stable softplus(x)
    p = jnp.exp(x - sp)                           # sigmoid(x)
    u = t * sp
    # (p*t, p, t, t*softplus(-x), (1-t)*softplus(x))
    return p * t, p, t, u - t * x, sp - u


def _dice_focal_kernel(pred_ref, true_ref, out_ref,
                       acc_pt, acc_p, acc_t, acc_bp, acc_bn, *,
                       tile_r, tile_m, acc_m, lp128,
                       num_k_total, num_k_inner, mask_tail, skip_oob):
    s = pl.program_id(0)
    k = pl.program_id(2)
    kk = s * num_k_inner + k                      # global block index along reduction

    accs = (acc_pt, acc_p, acc_t, acc_bp, acc_bn)

    @pl.when(k == 0)
    def _init():
        for a in accs:
            a[...] = jnp.zeros_like(a)

    def process_chunk(start, cm, masked):
        x = pred_ref[:, pl.ds(start, cm), :].astype(jnp.float32)
        t = true_ref[:, pl.ds(start, cm), :].astype(jnp.float32)
        if masked:
            sub = lax.broadcasted_iota(jnp.int32, (tile_r, cm, 128), 1)
            valid = (kk * tile_m + start + sub) < lp128
            x = jnp.where(valid, x, _NEG_FILL)    # -> p == 0 and softplus == 0 exactly
            t = jnp.where(valid, t, 0.0)
        for a, c in zip(accs, _contribs(x, t)):
            if cm == acc_m:
                a[...] += c
            else:   # cm is a multiple of 8 and > 8: fold to 8 sublanes with vreg adds
                a[...] += c.reshape(tile_r, cm // 8, 8, 128).sum(axis=1)

    num_full = tile_m // _CHUNK
    rem = tile_m - num_full * _CHUNK              # by construction: 0, a multiple of 8,
                                                  # or == tile_m when tile_m < 8

    def run(masked):
        if num_full > 0:
            def body(j, carry):
                process_chunk(pl.multiple_of(j * _CHUNK, _CHUNK), _CHUNK, masked)
                return carry
            lax.fori_loop(0, num_full, body, 0)
        if rem > 0:
            process_chunk(num_full * _CHUNK, rem, masked)

    if mask_tail:
        @pl.when(kk < num_k_total - 1)
        def _():
            run(False)

        @pl.when(kk == num_k_total - 1)
        def _():
            run(True)
    elif skip_oob:
        @pl.when(kk < num_k_total)
        def _():
            run(False)
    else:
        run(False)

    @pl.when(k == num_k_inner - 1)
    def _finalize():
        lane = lax.broadcasted_iota(jnp.int32, (tile_r, 128), 1)
        slab = jnp.zeros((tile_r, 128), jnp.float32)
        for idx, a in enumerate(accs):
            folded = jnp.sum(a[...], axis=1)                  # (tile_r, 128)
            tot = jnp.sum(folded, axis=1, keepdims=True)      # (tile_r, 1)
            slab = slab + jnp.where(lane == idx, tot, 0.0)
        out_ref[0] = slab                                     # one lane-dense store


def _per_plane_stats(y_pred, y_true):
    """Returns f32 (N*C, 5): [sum(p*t), sum(p), sum(t), bce_pos_sum, bce_neg_sum]."""
    n, c, h, w = y_pred.shape
    r = n * c
    l = h * w

    pred2d = y_pred.reshape(r, l)
    true2d = y_true.reshape(r, l)      # streamed in its stored dtype, cast in-kernel

    if l % 128 != 0:
        # TODO(synk): odd spatial sizes take a one-off pad (an extra HBM pass) up to a
        # lane multiple; the fill value makes padded pixels contribute exactly zero.
        pad = 128 - l % 128
        pred2d = jnp.pad(pred2d, ((0, 0), (0, pad)), constant_values=_NEG_FILL)
        true2d = jnp.pad(true2d, ((0, 0), (0, pad)), constant_values=0)
        l = l + pad
    lp128 = l // 128
    pred3d = pred2d.reshape(r, lp128, 128)    # free reshape, no data movement
    true3d = true2d.reshape(r, lp128, 128)

    tile_r = 8 if r >= 8 else r
    num_row_tiles = _cdiv(r, tile_r)

    itemsize = pred3d.dtype.itemsize + true3d.dtype.itemsize
    tile_m_cap = _VMEM_INPUT_BUDGET // (2 * tile_r * 128 * itemsize)
    tile_m_cap = max(_CHUNK, (tile_m_cap // _CHUNK) * _CHUNK)
    if lp128 <= tile_m_cap:
        if lp128 <= 8 or lp128 % 8 == 0:
            tile_m = lp128
        else:
            tile_m = (lp128 // 8) * 8          # keep tile_m a multiple of 8
    else:
        tile_m = tile_m_cap
    num_k_total = _cdiv(lp128, tile_m)
    acc_m = min(8, tile_m)

    # v7x: with only one row tile, shard the reduction across the two TensorCores.
    num_splits = 2 if (num_row_tiles == 1 and num_k_total >= 4) else 1
    num_k_inner = _cdiv(num_k_total, num_splits)
    mask_tail = num_k_total * tile_m > lp128
    skip_oob = num_splits * num_k_inner > num_k_total
    last_k = num_k_total - 1

    kernel = functools.partial(
        _dice_focal_kernel, tile_r=tile_r, tile_m=tile_m, acc_m=acc_m, lp128=lp128,
        num_k_total=num_k_total, num_k_inner=num_k_inner,
        mask_tail=mask_tail, skip_oob=skip_oob)

    # Generation-aware VMEM limit (v5e/v6e 128 MiB physical, v7x 64 MiB).
    try:
        vmem_cap = int(pltpu.get_tpu_info().vmem_capacity_bytes)
    except Exception:
        vmem_cap = 64 * 1024 * 1024
    vmem_limit = min(64 * 1024 * 1024, int(vmem_cap * 0.7))

    def in_map(si, ri, ki):
        return (ri, jnp.minimum(si * num_k_inner + ki, last_k), 0)

    def out_map(si, ri, ki):
        return (si * num_row_tiles + ri, 0, 0)

    raw = pl.pallas_call(
        kernel,
        out_shape=jax.ShapeDtypeStruct((num_splits * num_row_tiles, tile_r, 128),
                                       jnp.float32),
        grid_spec=pltpu.PrefetchScalarGridSpec(
            num_scalar_prefetch=0,
            grid=(num_splits, num_row_tiles, num_k_inner),
            in_specs=[
                pl.BlockSpec((tile_r, tile_m, 128), in_map),
                pl.BlockSpec((tile_r, tile_m, 128), in_map),
            ],
            out_specs=pl.BlockSpec((1, tile_r, 128), out_map),
            scratch_shapes=[pltpu.VMEM((tile_r, acc_m, 128), jnp.float32)] * 5,
        ),
        compiler_params=pltpu.CompilerParams(
            dimension_semantics=("parallel", "parallel", "arbitrary"),
            vmem_limit_bytes=vmem_limit),
    )(pred3d, true3d)

    raw = raw.reshape(num_splits, num_row_tiles * tile_r, 128)
    stats = jnp.sum(raw, axis=0)[:r, :5]       # combine split halves, drop padded rows
    return stats


def dice_plus_focal_loss(y_pred, y_true, consider, *,
                         weight_cls, weight_f_d,
                         mean_pos_focal, mean_neg_focal,
                         mean_pos_dice, mean_neg_dice,
                         mode="binary", from_logits=True,
                         smooth=0.0, eps=1e-7):
    """Forward of DicePlusFocalLoss: scalar loss, dtype of y_pred."""
    assert mode == "binary"
    assert from_logits
    n, c, h, w = y_pred.shape
    assert y_true.shape == (n, c, h, w)
    assert consider.shape[0] == n and consider.shape[1] == c

    w_fd = np.asarray(weight_f_d, np.float64); w_fd = w_fd / w_fd.sum()
    w_cls = np.asarray(weight_cls, np.float64); w_cls = w_cls / w_cls.sum()
    mpf = np.asarray(mean_pos_focal, np.float64); mnf = np.asarray(mean_neg_focal, np.float64)
    w_pos_focal = mpf / (mpf + mnf)
    mpd = np.asarray(mean_pos_dice, np.float64); mnd = np.asarray(mean_neg_dice, np.float64)
    w_pos_dice = mpd / (mpd + mnd)
    w_neg_dice = mnd / (mpd + mnd)

    stats = _per_plane_stats(y_pred, y_true).reshape(n, c, 5)
    sum_pt = stats[..., 0]
    sum_p = stats[..., 1]
    sum_t = stats[..., 2]
    bce_pos = stats[..., 3]
    bce_neg = stats[..., 4]

    cons = consider.astype(jnp.float32)

    # Dice part (finalized here from the raw sums).
    cardinality = sum_p + sum_t
    score = (2.0 * sum_pt + smooth) / jnp.maximum(cardinality + smooth, eps)
    is_pos = sum_t > 0.0
    dice_l = (1.0 - score) * is_pos.astype(jnp.float32)
    wd = jnp.where(is_pos,
                   jnp.asarray(w_pos_dice, jnp.float32)[None, :],
                   jnp.asarray(w_neg_dice, jnp.float32)[None, :])
    loss_dice_c = jnp.mean(cons * wd * dice_l, axis=0)                       # (C,)

    # Focal (BCEWithLogits with pos_weight) part.
    pw = jnp.asarray(w_pos_focal, jnp.float32)[None, :]
    bce_mean = (pw * bce_pos + bce_neg) / float(h * w)
    loss_focal_c = jnp.mean(cons * bce_mean, axis=0)                         # (C,)

    total = jnp.sum(jnp.asarray(w_cls, jnp.float32)
                    * (float(w_fd[0]) * loss_focal_c + float(w_fd[1]) * loss_dice_c))
    return total.astype(y_pred.dtype)


def _reference(y_pred, y_true, consider, *, weight_cls, weight_f_d,
               mean_pos_focal, mean_neg_focal, mean_pos_dice, mean_neg_dice,
               smooth=0.0, eps=1e-7):
    n, c, h, w = y_pred.shape
    w_fd = np.asarray(weight_f_d, np.float64); w_fd = w_fd / w_fd.sum()
    w_cls = np.asarray(weight_cls, np.float64); w_cls = w_cls / w_cls.sum()
    mpf = np.asarray(mean_pos_focal, np.float64); mnf = np.asarray(mean_neg_focal, np.float64)
    w_pos_focal = mpf / (mpf + mnf)
    mpd = np.asarray(mean_pos_dice, np.float64); mnd = np.asarray(mean_neg_dice, np.float64)
    w_pos_dice = mpd / (mpd + mnd); w_neg_dice = mnd / (mpd + mnd)

    x = y_pred.astype(jnp.float32)
    t = y_true.astype(jnp.float32)
    cons = consider.astype(jnp.float32)
    total = jnp.float32(0.0)
    for icls in range(c):
        xi = x[:, icls].reshape(n, -1)
        ti = t[:, icls].reshape(n, -1)
        p = jax.nn.sigmoid(xi)
        inter = jnp.sum(p * ti, axis=1)
        card = jnp.sum(p + ti, axis=1)
        score = (2.0 * inter + smooth) / jnp.maximum(card + smooth, eps)
        sum_t = jnp.sum(ti, axis=1)
        dl = (1.0 - score) * (sum_t > 0).astype(jnp.float32)
        wd = jnp.where(sum_t > 0, jnp.float32(w_pos_dice[icls]), jnp.float32(w_neg_dice[icls]))
        loss_dice = jnp.mean(cons[:, icls] * wd * dl)
        sp = jax.nn.softplus(xi)
        bce = float(w_pos_focal[icls]) * ti * (sp - xi) + (1.0 - ti) * sp
        loss_focal = jnp.mean(cons[:, icls] * jnp.mean(bce, axis=1))
        total = total + jnp.float32(w_cls[icls]) * (
            jnp.float32(w_fd[0]) * loss_focal + jnp.float32(w_fd[1]) * loss_dice)
    return total


if __name__ == "__main__":
    key = jax.random.PRNGKey(0)
    k1, k2, k3 = jax.random.split(key, 3)

    N, C, H, W = 2, 4, 16, 16
    y_pred = jax.random.normal(k1, (N, C, H, W), dtype=jnp.float32)
    y_true = (jax.random.uniform(k2, (N, C, H, W)) > 0.5).astype(jnp.float32)
    y_true = y_true.at[0, 1].set(0.0)                       # exercise the empty-mask path
    consider = (jax.random.uniform(k3, (N, C)) > 0.2).astype(jnp.float32)

    weight_cls = [1.0, 2.0, 1.0, 0.5]
    weight_f_d = [1.0, 1.0]
    mean_pos_focal = [0.3, 0.2, 0.4, 0.1]
    mean_neg_focal = [0.7, 0.8, 0.6, 0.9]
    mean_pos_dice = [0.25, 0.3, 0.2, 0.4]
    mean_neg_dice = [0.75, 0.7, 0.8, 0.6]

    loss = dice_plus_focal_loss(
        y_pred, y_true, consider,
        weight_cls=weight_cls, weight_f_d=weight_f_d,
        mean_pos_focal=mean_pos_focal, mean_neg_focal=mean_neg_focal,
        mean_pos_dice=mean_pos_dice, mean_neg_dice=mean_neg_dice)
    loss = jax.block_until_ready(loss)

    ref = _reference(
        y_pred, y_true, consider,
        weight_cls=weight_cls, weight_f_d=weight_f_d,
        mean_pos_focal=mean_pos_focal, mean_neg_focal=mean_neg_focal,
        mean_pos_dice=mean_pos_dice, mean_neg_dice=mean_neg_dice)

    assert loss.shape == (), loss.shape
    assert jnp.allclose(loss.astype(jnp.float32), ref, atol=2e-5, rtol=5e-4), (loss, ref)
    print("KERNEL_OK")
</pallas_src>

<mosaic_0001>
module attributes {stable_mosaic.version = 11 : i64} {
  func.func @_dice_focal_kernel(%arg0: i32, %arg1: i32, %arg2: i32, %arg3: memref<8x2x128xf32, #tpu.memory_space<vmem>>, %arg4: memref<8x2x128xf32, #tpu.memory_space<vmem>>, %arg5: memref<1x8x128xf32, #tpu.memory_space<vmem>>, %arg6: memref<8x2x128xf32, #tpu.memory_space<vmem>>, %arg7: memref<8x2x128xf32, #tpu.memory_space<vmem>>, %arg8: memref<8x2x128xf32, #tpu.memory_space<vmem>>, %arg9: memref<8x2x128xf32, #tpu.memory_space<vmem>>, %arg10: memref<8x2x128xf32, #tpu.memory_space<vmem>>) attributes {dimension_semantics = [#tpu.dimension_semantics<parallel>, #tpu.dimension_semantics<parallel>, #tpu.dimension_semantics<arbitrary>], iteration_bounds = array<i64: 1, 1, 1>, scalar_prefetch = 0 : i64, scratch_operands = 5 : i64, tpu.core_type = #tpu.core_type<tc>, window_params = [{transform_indices = @transform_0, window_bounds = array<i64: 8, 2, 128>}, {transform_indices = @transform_1, window_bounds = array<i64: 8, 2, 128>}, {transform_indices = @transform_2, window_bounds = array<i64: 1, 8, 128>}]} {
    %c0_i32 = arith.constant 0 : i32
    %0 = arith.cmpi eq, %arg2, %c0_i32 : i32
    %1 = arith.extui %0 : i1 to i32
    %c0_i32_0 = arith.constant 0 : i32
    %2 = arith.cmpi ne, %1, %c0_i32_0 : i32
    scf.if %2 {
      %cst_40 = arith.constant 0.000000e+00 : f32
      %40 = vector.broadcast %cst_40 : f32 to vector<8x2x128xf32>
      %c0_41 = arith.constant 0 : index
      %c0_42 = arith.constant 0 : index
      %c0_43 = arith.constant 0 : index
      %41 = vector.load %arg6[%c0_41, %c0_42, %c0_43] : memref<8x2x128xf32, #tpu.memory_space<vmem>>, vector<8x2x128xf32>
      tpu.vector_store %arg6[%c0_41, %c0_42, %c0_43], %40 {strides = array<i32>} : memref<8x2x128xf32, #tpu.memory_space<vmem>>, vector<8x2x128xf32>,
      %cst_44 = arith.constant 0.000000e+00 : f32
      %42 = vector.broadcast %cst_44 : f32 to vector<8x2x128xf32>
      %c0_45 = arith.constant 0 : index
      %c0_46 = arith.constant 0 : index
      %c0_47 = arith.constant 0 : index
      %43 = vector.load %arg7[%c0_45, %c0_46, %c0_47] : memref<8x2x128xf32, #tpu.memory_space<vmem>>, vector<8x2x128xf32>
      tpu.vector_store %arg7[%c0_45, %c0_46, %c0_47], %42 {strides = array<i32>} : memref<8x2x128xf32, #tpu.memory_space<vmem>>, vector<8x2x128xf32>,
      %cst_48 = arith.constant 0.000000e+00 : f32
      %44 = vector.broadcast %cst_48 : f32 to vector<8x2x128xf32>
      %c0_49 = arith.constant 0 : index
      %c0_50 = arith.constant 0 : index
      %c0_51 = arith.constant 0 : index
      %45 = vector.load %arg8[%c0_49, %c0_50, %c0_51] : memref<8x2x128xf32, #tpu.memory_space<vmem>>, vector<8x2x128xf32>
      tpu.vector_store %arg8[%c0_49, %c0_50, %c0_51], %44 {strides = array<i32>} : memref<8x2x128xf32, #tpu.memory_space<vmem>>, vector<8x2x128xf32>,
      %cst_52 = arith.constant 0.000000e+00 : f32
      %46 = vector.broadcast %cst_52 : f32 to vector<8x2x128xf32>
      %c0_53 = arith.constant 0 : index
      %c0_54 = arith.constant 0 : index
      %c0_55 = arith.constant 0 : index
      %47 = vector.load %arg9[%c0_53, %c0_54, %c0_55] : memref<8x2x128xf32, #tpu.memory_space<vmem>>, vector<8x2x128xf32>
      tpu.vector_store %arg9[%c0_53, %c0_54, %c0_55], %46 {strides = array<i32>} : memref<8x2x128xf32, #tpu.memory_space<vmem>>, vector<8x2x128xf32>,
      %cst_56 = arith.constant 0.000000e+00 : f32
      %48 = vector.broadcast %cst_56 : f32 to vector<8x2x128xf32>
      %c0_57 = arith.constant 0 : index
      %c0_58 = arith.constant 0 : index
      %c0_59 = arith.constant 0 : index
      %49 = vector.load %arg10[%c0_57, %c0_58, %c0_59] : memref<8x2x128xf32, #tpu.memory_space<vmem>>, vector<8x2x128xf32>
      tpu.vector_store %arg10[%c0_57, %c0_58, %c0_59], %48 {strides = array<i32>} : memref<8x2x128xf32, #tpu.memory_space<vmem>>, vector<8x2x128xf32>,
    } else {
    }
    %c0 = arith.constant 0 : index
    %c0_1 = arith.constant 0 : index
    %c0_2 = arith.constant 0 : index
    %3 = vector.load %arg3[%c0, %c0_1, %c0_2] : memref<8x2x128xf32, #tpu.memory_space<vmem>>, vector<8x2x128xf32>
    %c0_3 = arith.constant 0 : index
    %c0_4 = arith.constant 0 : index
    %c0_5 = arith.constant 0 : index
    %4 = vector.load %arg4[%c0_3, %c0_4, %c0_5] : memref<8x2x128xf32, #tpu.memory_space<vmem>>, vector<8x2x128xf32>
    %5 = math.absf %3 : vector<8x2x128xf32>
    %cst = arith.constant 0.000000e+00 : f32
    %6 = vector.broadcast %cst : f32 to vector<8x2x128xf32>
    %7 = arith.subf %6, %5 : vector<8x2x128xf32>
    %8 = math.exp %7 : vector<8x2x128xf32>
    %cst_6 = arith.constant 0.000000e+00 : f32
    %9 = vector.broadcast %cst_6 : f32 to vector<8x2x128xf32>
    %10 = arith.maximumf %3, %9 : vector<8x2x128xf32>
    %cst_7 = arith.constant 1.000000e+00 : f32
    %11 = vector.broadcast %cst_7 : f32 to vector<8x2x128xf32>
    %12 = arith.addf %11, %8 : vector<8x2x128xf32>
    %13 = math.log %12 : vector<8x2x128xf32>
    %14 = arith.addf %10, %13 : vector<8x2x128xf32>
    %15 = arith.subf %3, %14 : vector<8x2x128xf32>
    %16 = math.exp %15 : vector<8x2x128xf32>
    %17 = arith.mulf %4, %14 : vector<8x2x128xf32>
    %18 = arith.mulf %16, %4 : vector<8x2x128xf32>
    %19 = arith.mulf %4, %3 : vector<8x2x128xf32>
    %20 = arith.subf %17, %19 : vector<8x2x128xf32>
    %21 = arith.subf %14, %17 : vector<8x2x128xf32>
    %c0_8 = arith.constant 0 : index
    %c0_9 = arith.constant 0 : index
    %c0_10 = arith.constant 0 : index
    %22 = vector.load %arg6[%c0_8, %c0_9, %c0_10] : memref<8x2x128xf32, #tpu.memory_space<vmem>>, vector<8x2x128xf32>
    %23 = arith.addf %22, %18 : vector<8x2x128xf32>
    %c0_11 = arith.constant 0 : index
    %c0_12 = arith.constant 0 : index
    %c0_13 = arith.constant 0 : index
    %24 = vector.load %arg6[%c0_11, %c0_12, %c0_13] : memref<8x2x128xf32, #tpu.memory_space<vmem>>, vector<8x2x128xf32>
    tpu.vector_store %arg6[%c0_11, %c0_12, %c0_13], %23 {strides = array<i32>} : memref<8x2x128xf32, #tpu.memory_space<vmem>>, vector<8x2x128xf32>,
    %c0_14 = arith.constant 0 : index
    %c0_15 = arith.constant 0 : index
    %c0_16 = arith.constant 0 : index
    %25 = vector.load %arg7[%c0_14, %c0_15, %c0_16] : memref<8x2x128xf32, #tpu.memory_space<vmem>>, vector<8x2x128xf32>
    %26 = arith.addf %25, %16 : vector<8x2x128xf32>
    %c0_17 = arith.constant 0 : index
    %c0_18 = arith.constant 0 : index
    %c0_19 = arith.constant 0 : index
    %27 = vector.load %arg7[%c0_17, %c0_18, %c0_19] : memref<8x2x128xf32, #tpu.memory_space<vmem>>, vector<8x2x128xf32>
    tpu.vector_store %arg7[%c0_17, %c0_18, %c0_19], %26 {strides = array<i32>} : memref<8x2x128xf32, #tpu.memory_space<vmem>>, vector<8x2x128xf32>,
    %c0_20 = arith.constant 0 : index
    %c0_21 = arith.constant 0 : index
    %c0_22 = arith.constant 0 : index
    %28 = vector.load %arg8[%c0_20, %c0_21, %c0_22] : memref<8x2x128xf32, #tpu.memory_space<vmem>>, vector<8x2x128xf32>
    %29 = arith.addf %28, %4 : vector<8x2x128xf32>
    %c0_23 = arith.constant 0 : index
    %c0_24 = arith.constant 0 : index
    %c0_25 = arith.constant 0 : index
    %30 = vector.load %arg8[%c0_23, %c0_24, %c0_25] : memref<8x2x128xf32, #tpu.memory_space<vmem>>, vector<8x2x128xf32>
    tpu.vector_store %arg8[%c0_23, %c0_24, %c0_25], %29 {strides = array<i32>} : memref<8x2x128xf32, #tpu.memory_space<vmem>>, vector<8x2x128xf32>,
    %c0_26 = arith.constant 0 : index
    %c0_27 = arith.constant 0 : index
    %c0_28 = arith.constant 0 : index
    %31 = vector.load %arg9[%c0_26, %c0_27, %c0_28] : memref<8x2x128xf32, #tpu.memory_space<vmem>>, vector<8x2x128xf32>
    %32 = arith.addf %31, %20 : vector<8x2x128xf32>
    %c0_29 = arith.constant 0 : index
    %c0_30 = arith.constant 0 : index
    %c0_31 = arith.constant 0 : index
    %33 = vector.load %arg9[%c0_29, %c0_30, %c0_31] : memref<8x2x128xf32, #tpu.memory_space<vmem>>, vector<8x2x128xf32>
    tpu.vector_store %arg9[%c0_29, %c0_30, %c0_31], %32 {strides = array<i32>} : memref<8x2x128xf32, #tpu.memory_space<vmem>>, vector<8x2x128xf32>,
    %c0_32 = arith.constant 0 : index
    %c0_33 = arith.constant 0 : index
    %c0_34 = arith.constant 0 : index
    %34 = vector.load %arg10[%c0_32, %c0_33, %c0_34] : memref<8x2x128xf32, #tpu.memory_space<vmem>>, vector<8x2x128xf32>
    %35 = arith.addf %34, %21 : vector<8x2x128xf32>
    %c0_35 = arith.constant 0 : index
    %c0_36 = arith.constant 0 : index
    %c0_37 = arith.constant 0 : index
    %36 = vector.load %arg10[%c0_35, %c0_36, %c0_37] : memref<8x2x128xf32, #tpu.memory_space<vmem>>, vector<8x2x128xf32>
    tpu.vector_store %arg10[%c0_35, %c0_36, %c0_37], %35 {strides = array<i32>} : memref<8x2x128xf32, #tpu.memory_space<vmem>>, vector<8x2x128xf32>,
    %c0_i32_38 = arith.constant 0 : i32
    %37 = arith.cmpi eq, %arg2, %c0_i32_38 : i32
    %38 = arith.extui %37 : i1 to i32
    %c0_i32_39 = arith.constant 0 : i32
    %39 = arith.cmpi ne, %38, %c0_i32_39 : i32
    scf.if %39 {
      %40 = tpu.iota {dimensions = array<i32: 1>} : vector<8x128xi32>
      %cst_40 = arith.constant 0.000000e+00 : f32
      %41 = vector.broadcast %cst_40 : f32 to vector<8x128xf32>
      %c0_41 = arith.constant 0 : index
      %c0_42 = arith.constant 0 : index
      %c0_43 = arith.constant 0 : index
      %42 = vector.load %arg6[%c0_41, %c0_42, %c0_43] : memref<8x2x128xf32, #tpu.memory_space<vmem>>, vector<8x2x128xf32>
      %cst_44 = arith.constant dense<0.000000e+00> : vector<8x128xf32>
      %43 = vector.multi_reduction <add>, %42, %cst_44 [1] : vector<8x2x128xf32> to vector<8x128xf32>
      %cst_45 = arith.constant dense<0.000000e+00> : vector<8xf32>
      %44 = vector.multi_reduction <add>, %43, %cst_45 [1] : vector<8x128xf32> to vector<8xf32>
      %45 = vector.shape_cast %44 : vector<8xf32> to vector<8x1xf32>
      %c0_i32_46 = arith.constant 0 : i32
      %46 = vector.broadcast %c0_i32_46 : i32 to vector<8x128xi32>
      %47 = arith.cmpi eq, %40, %46 : vector<8x128xi32>
      %cst_47 = arith.constant 0.000000e+00 : f32
      %48 = vector.shape_cast %45 : vector<8x1xf32> to vector<8x1xf32>
      %49 = vector.broadcast %48 : vector<8x1xf32> to vector<8x128xf32>
      %50 = vector.broadcast %cst_47 : f32 to vector<8x128xf32>
      %51 = arith.select %47, %49, %50 : vector<8x128xi1>, vector<8x128xf32>
      %52 = arith.addf %41, %51 : vector<8x128xf32>
      %c0_48 = arith.constant 0 : index
      %c0_49 = arith.constant 0 : index
      %c0_50 = arith.constant 0 : index
      %53 = vector.load %arg7[%c0_48, %c0_49, %c0_50] : memref<8x2x128xf32, #tpu.memory_space<vmem>>, vector<8x2x128xf32>
      %cst_51 = arith.constant dense<0.000000e+00> : vector<8x128xf32>
      %54 = vector.multi_reduction <add>, %53, %cst_51 [1] : vector<8x2x128xf32> to vector<8x128xf32>
      %cst_52 = arith.constant dense<0.000000e+00> : vector<8xf32>
      %55 = vector.multi_reduction <add>, %54, %cst_52 [1] : vector<8x128xf32> to vector<8xf32>
      %56 = vector.shape_cast %55 : vector<8xf32> to vector<8x1xf32>
      %c1_i32 = arith.constant 1 : i32
      %57 = vector.broadcast %c1_i32 : i32 to vector<8x128xi32>
      %58 = arith.cmpi eq, %40, %57 : vector<8x128xi32>
      %cst_53 = arith.constant 0.000000e+00 : f32
      %59 = vector.shape_cast %56 : vector<8x1xf32> to vector<8x1xf32>
      %60 = vector.broadcast %59 : vector<8x1xf32> to vector<8x128xf32>
      %61 = vector.broadcast %cst_53 : f32 to vector<8x128xf32>
      %62 = arith.select %58, %60, %61 : vector<8x128xi1>, vector<8x128xf32>
      %63 = arith.addf %52, %62 : vector<8x128xf32>
      %c0_54 = arith.constant 0 : index
      %c0_55 = arith.constant 0 : index
      %c0_56 = arith.constant 0 : index
      %64 = vector.load %arg8[%c0_54, %c0_55, %c0_56] : memref<8x2x128xf32, #tpu.memory_space<vmem>>, vector<8x2x128xf32>
      %cst_57 = arith.constant dense<0.000000e+00> : vector<8x128xf32>
      %65 = vector.multi_reduction <add>, %64, %cst_57 [1] : vector<8x2x128xf32> to vector<8x128xf32>
      %cst_58 = arith.constant dense<0.000000e+00> : vector<8xf32>
      %66 = vector.multi_reduction <add>, %65, %cst_58 [1] : vector<8x128xf32> to vector<8xf32>
      %67 = vector.shape_cast %66 : vector<8xf32> to vector<8x1xf32>
      %c2_i32 = arith.constant 2 : i32
      %68 = vector.broadcast %c2_i32 : i32 to vector<8x128xi32>
      %69 = arith.cmpi eq, %40, %68 : vector<8x128xi32>
      %cst_59 = arith.constant 0.000000e+00 : f32
      %70 = vector.shape_cast %67 : vector<8x1xf32> to vector<8x1xf32>
      %71 = vector.broadcast %70 : vector<8x1xf32> to vector<8x128xf32>
      %72 = vector.broadcast %cst_59 : f32 to vector<8x128xf32>
      %73 = arith.select %69, %71, %72 : vector<8x128xi1>, vector<8x128xf32>
      %74 = arith.addf %63, %73 : vector<8x128xf32>
      %c0_60 = arith.constant 0 : index
      %c0_61 = arith.constant 0 : index
      %c0_62 = arith.constant 0 : index
      %75 = vector.load %arg9[%c0_60, %c0_61, %c0_62] : memref<8x2x128xf32, #tpu.memory_space<vmem>>, vector<8x2x128xf32>
      %cst_63 = arith.constant dense<0.000000e+00> : vector<8x128xf32>
      %76 = vector.multi_reduction <add>, %75, %cst_63 [1] : vector<8x2x128xf32> to vector<8x128xf32>
      %cst_64 = arith.constant dense<0.000000e+00> : vector<8xf32>
      %77 = vector.multi_reduction <add>, %76, %cst_64 [1] : vector<8x128xf32> to vector<8xf32>
      %78 = vector.shape_cast %77 : vector<8xf32> to vector<8x1xf32>
      %c3_i32 = arith.constant 3 : i32
      %79 = vector.broadcast %c3_i32 : i32 to vector<8x128xi32>
      %80 = arith.cmpi eq, %40, %79 : vector<8x128xi32>
      %cst_65 = arith.constant 0.000000e+00 : f32
      %81 = vector.shape_cast %78 : vector<8x1xf32> to vector<8x1xf32>
      %82 = vector.broadcast %81 : vector<8x1xf32> to vector<8x128xf32>
      %83 = vector.broadcast %cst_65 : f32 to vector<8x128xf32>
      %84 = arith.select %80, %82, %83 : vector<8x128xi1>, vector<8x128xf32>
      %85 = arith.addf %74, %84 : vector<8x128xf32>
      %c0_66 = arith.constant 0 : index
      %c0_67 = arith.constant 0 : index
      %c0_68 = arith.constant 0 : index
      %86 = vector.load %arg10[%c0_66, %c0_67, %c0_68] : memref<8x2x128xf32, #tpu.memory_space<vmem>>, vector<8x2x128xf32>
      %cst_69 = arith.constant dense<0.000000e+00> : vector<8x128xf32>
      %87 = vector.multi_reduction <add>, %86, %cst_69 [1] : vector<8x2x128xf32> to vector<8x128xf32>
      %cst_70 = arith.constant dense<0.000000e+00> : vector<8xf32>
      %88 = vector.multi_reduction <add>, %87, %cst_70 [1] : vector<8x128xf32> to vector<8xf32>
      %89 = vector.shape_cast %88 : vector<8xf32> to vector<8x1xf32>
      %c4_i32 = arith.constant 4 : i32
      %90 = vector.broadcast %c4_i32 : i32 to vector<8x128xi32>
      %91 = arith.cmpi eq, %40, %90 : vector<8x128xi32>
      %cst_71 = arith.constant 0.000000e+00 : f32
      %92 = vector.shape_cast %89 : vector<8x1xf32> to vector<8x1xf32>
      %93 = vector.broadcast %92 : vector<8x1xf32> to vector<8x128xf32>
      %94 = vector.broadcast %cst_71 : f32 to vector<8x128xf32>
      %95 = arith.select %91, %93, %94 : vector<8x128xi1>, vector<8x128xf32>
      %96 = arith.addf %85, %95 : vector<8x128xf32>
      %c0_72 = arith.constant 0 : index
      %c0_73 = arith.constant 0 : index
      %c0_74 = arith.constant 0 : index
      %97 = vector.load %arg5[%c0_72, %c0_73, %c0_74] : memref<1x8x128xf32, #tpu.memory_space<vmem>>, vector<1x8x128xf32>
      %98 = vector.shape_cast %97 : vector<1x8x128xf32> to vector<8x128xf32>
      %99 = vector.shape_cast %96 : vector<8x128xf32> to vector<1x8x128xf32>
      tpu.vector_store %arg5[%c0_72, %c0_73, %c0_74], %99 {strides = array<i32>} : memref<1x8x128xf32, #tpu.memory_space<vmem>>, vector<1x8x128xf32>,
    } else {
    }
    return
  }
  func.func @transform_0(%arg0: i32, %arg1: i32, %arg2: i32) -> (i32, i32, i32) {
    %c1_i32 = arith.constant 1 : i32
    %0 = arith.muli %arg0, %c1_i32 : i32
    %1 = arith.addi %0, %arg2 : i32
    %c0_i32 = arith.constant 0 : i32
    %2 = arith.minsi %1, %c0_i32 : i32
    %c0_i32_0 = arith.constant 0 : i32
    %c0_i32_1 = arith.constant 0 : i32
    return %arg1, %2, %c0_i32_0 : i32, i32, i32
  }
  func.func @transform_1(%arg0: i32, %arg1: i32, %arg2: i32) -> (i32, i32, i32) {
    %c1_i32 = arith.constant 1 : i32
    %0 = arith.muli %arg0, %c1_i32 : i32
    %1 = arith.addi %0, %arg2 : i32
    %c0_i32 = arith.constant 0 : i32
    %2 = arith.minsi %1, %c0_i32 : i32
    %c0_i32_0 = arith.constant 0 : i32
    %c0_i32_1 = arith.constant 0 : i32
    return %arg1, %2, %c0_i32_0 : i32, i32, i32
  }
  func.func @transform_2(%arg0: i32, %arg1: i32, %arg2: i32) -> (i32, i32, i32) {
    %c1_i32 = arith.constant 1 : i32
    %0 = arith.muli %arg0, %c1_i32 : i32
    %1 = arith.addi %0, %arg1 : i32
    %c0_i32 = arith.constant 0 : i32
    %c0_i32_0 = arith.constant 0 : i32
    %c0_i32_1 = arith.constant 0 : i32
    return %1, %c0_i32, %c0_i32_0 : i32, i32, i32
  }
}

</mosaic_0001>

<bundles_post_ra>
// kernel: tpu_custom_call.1
= control target key start
LH: loop header
LB: loop body
LE: loop exit
PB: predicated region body
PF: predicated region fallthrough
CT: control target
= control target key end

     0   :  { %7 = vsyncpa [#allocation8], 0  ;;  %s1329_s0 = inlined_call_operand.hbm [shape: f32[8,2,128], index: 0, kind: input, shape index: {}]   ;;  %s1330_s1 = inlined_call_operand.hbm [shape: f32[8,2,128], index: 1, kind: input, shape index: {}]   ;;  %s1331_s2 = inlined_call_operand.hbm [shape: f32[1,8,128], index: 2, kind: output, shape index: {}]  }
   0x1   :  { %8 = vsyncpa [#allocation11], 0 }
   0x2   :  { %9 = vsyncpa [#allocation9], 0  ;;  %s961_s9 = smov [#allocation7]   ;;  %s889_s13 = scalar_lea.hbm %s1329_s0, 256 }
   0x3   :  { %s20_s10 = sshll.u32 %s961_s9, 4  ;;  %p890_p0 = scmp.ne.s32.totalorder %s1329_s0, %s889_s13  ;;  %s21_s10 = int_to_ptr.vmem [resolvable:$true] %s20_s10 }
   0x4   :  { %p893_p1 = scmp.lt.u32.totalorder %s889_s13, %s1329_s0 }
   0x6   :  { %p895_p2 = pnand %p893_p1, %p890_p0 }
   0x8   :  { %898 = shalt.err (!%p895_p2)
}
   0x9   :  { %s899_s18 = scalar_lea.vmem %s21_s10, 256  ;;  %p904_p4 = scmp.lt.s32.totalorder %s21_s10, %s21_s10 }
   0xa   :  { %p900_p3 = scmp.ne.s32.totalorder %s21_s10, %s899_s18  ;;  %p905_p5 = scmp.lt.s32.totalorder %s899_s18, %s899_s18 }
   0xc   :  { %p906_p6 = por %p905_p5, %p904_p4 }
   0xe   :  { %p907_p7 = pnand %p906_p6, %p900_p3 }
  0x10   :  { %910 = shalt.err (!%p907_p7)
}
  0x11   :  { %s962_s19 = smov 32   ;;  %s963_s20 = smov 2  }
  0x12   :  { %26 = dma.hbm_to_vmem [thread:$0]  %s1329_s0, 256, %s21_s10, [#allocation8], %s962_s19, %s962_s19, %s963_s20  }
  0x13   :  { %s964_s23 = smov [#allocation10]   ;;  %s911_s27 = scalar_lea.hbm %s1330_s1, 256 }
  0x14   :  { %s37_s24 = sshll.u32 %s964_s23, 4  ;;  %p912_p8 = scmp.ne.s32.totalorder %s1330_s1, %s911_s27  ;;  %s38_s24 = int_to_ptr.vmem [resolvable:$true] %s37_s24 }
  0x15   :  { %p915_p9 = scmp.lt.u32.totalorder %s911_s27, %s1330_s1 }
  0x17   :  { %p917_p10 = pnand %p915_p9, %p912_p8 }
  0x19   :  { %920 = shalt.err (!%p917_p10)
}
  0x1a   :  { %s921_s4 = scalar_lea.vmem %s38_s24, 256  ;;  %p926_p12 = scmp.lt.s32.totalorder %s38_s24, %s38_s24 }
  0x1b   :  { %p922_p11 = scmp.ne.s32.totalorder %s38_s24, %s921_s4  ;;  %p927_p13 = scmp.lt.s32.totalorder %s921_s4, %s921_s4 }
  0x1d   :  { %p928_p0 = por %p927_p13, %p926_p12 }
  0x1f   :  { %p929_p1 = pnand %p928_p0, %p922_p11 }
  0x21   :  { %932 = shalt.err (!%p929_p1)
}
  0x22   :  { %43 = dma.hbm_to_vmem [thread:$0]  %s1330_s1, 256, %s38_s24, [#allocation11], %s962_s19, %s962_s19, %s963_s20  }
  0x23   :  { %955 = dma.done.wait [#allocation8], 256  }
  0x24   :  { %956 = vsyncadd [#allocation8], 4294967040 }
  0x25   :  { %957 = dma.done.wait [#allocation11], 256  }
  0x26   :  { %958 = vsyncadd [#allocation11], 4294967040  ;;  %v965_v0 = vmov 0.0   ;;  %v1006_v1 = vld [vmem:[#allocation7] sm:$0x3]  ;;  %vm386_vm0 = vcmask 1041408  }
  0x27   :  { %61 = vst [vmem:[#allocation2] sm:$0x3] %v965_v0  ;;  %62 = vst [vmem:[#allocation2 + $0x2] sm:$0x3] %v965_v0  ;;  %v1008_v2 = vld [vmem:[#allocation7 + $0x2] sm:$0x3] }
  0x28   :  { %63 = vst [vmem:[#allocation2 + $0x4] sm:$0x3] %v965_v0  ;;  %64 = vst [vmem:[#allocation2 + $0x6] sm:$0x3] %v965_v0  ;;  %v1010_v3 = vld [vmem:[#allocation7 + $0x4] sm:$0x3] }
  0x29   :  { %65 = vst [vmem:[#allocation2 + $0x8] sm:$0x3] %v965_v0  ;;  %66 = vst [vmem:[#allocation2 + $0xa] sm:$0x3] %v965_v0  ;;  %v1012_v4 = vld [vmem:[#allocation7 + $0x6] sm:$0x3] }
  0x2a   :  { %67 = vst [vmem:[#allocation2 + $0xc] sm:$0x3] %v965_v0  ;;  %68 = vst [vmem:[#allocation2 + $0xe] sm:$0x3] %v965_v0  ;;  %v1014_v5 = vld [vmem:[#allocation7 + $0x8] sm:$0x3] }
  0x2b   :  { %69 = vst [vmem:[#allocation3] sm:$0x3] %v965_v0  ;;  %70 = vst [vmem:[#allocation3 + $0x2] sm:$0x3] %v965_v0  ;;  %v1016_v6 = vld [vmem:[#allocation7 + $0xa] sm:$0x3] }
  0x2c   :  { %71 = vst [vmem:[#allocation3 + $0x4] sm:$0x3] %v965_v0  ;;  %72 = vst [vmem:[#allocation3 + $0x6] sm:$0x3] %v965_v0  ;;  %v1018_v7 = vld [vmem:[#allocation7 + $0xc] sm:$0x3] }
  0x2d   :  { %73 = vst [vmem:[#allocation3 + $0x8] sm:$0x3] %v965_v0  ;;  %74 = vst [vmem:[#allocation3 + $0xa] sm:$0x3] %v965_v0  ;;  %v1020_v8 = vld [vmem:[#allocation7 + $0xe] sm:$0x3] }
  0x2e   :  { %75 = vst [vmem:[#allocation3 + $0xc] sm:$0x3] %v965_v0  ;;  %76 = vst [vmem:[#allocation3 + $0xe] sm:$0x3] %v965_v0  ;;  %v1022_v9 = vld [vmem:[#allocation10 + $0xe] sm:$0x3] }
  0x2f   :  { %77 = vst [vmem:[#allocation4] sm:$0x3] %v965_v0  ;;  %78 = vst [vmem:[#allocation4 + $0x2] sm:$0x3] %v965_v0  ;;  %v117_v10 = vand.u32 2147483647, %v1006_v1  ;;  %v1034_v18 = vmul.f32 %v1022_v9, %v1020_v8 }
  0x30   :  { %79 = vst [vmem:[#allocation4 + $0x4] sm:$0x3] %v965_v0  ;;  %80 = vst [vmem:[#allocation4 + $0x6] sm:$0x3] %v965_v0  ;;  %v118_v11 = vand.u32 2147483647, %v1008_v2 }
  0x31   :  { %81 = vst [vmem:[#allocation4 + $0x8] sm:$0x3] %v965_v0  ;;  %82 = vst [vmem:[#allocation4 + $0xa] sm:$0x3] %v965_v0  ;;  %v119_v12 = vand.u32 2147483647, %v1010_v3 }
  0x32   :  { %83 = vst [vmem:[#allocation4 + $0xc] sm:$0x3] %v965_v0  ;;  %84 = vst [vmem:[#allocation4 + $0xe] sm:$0x3] %v965_v0  ;;  %v120_v13 = vand.u32 2147483647, %v1012_v4 }
  0x33   :  { %85 = vst [vmem:[#allocation5] sm:$0x3] %v965_v0  ;;  %86 = vst [vmem:[#allocation5 + $0x2] sm:$0x3] %v965_v0  ;;  %v121_v14 = vand.u32 2147483647, %v1014_v5 }
  0x34   :  { %87 = vst [vmem:[#allocation5 + $0x4] sm:$0x3] %v965_v0  ;;  %88 = vst [vmem:[#allocation5 + $0x6] sm:$0x3] %v965_v0  ;;  %v122_v15 = vand.u32 2147483647, %v1016_v6 }
  0x35   :  { %89 = vst [vmem:[#allocation5 + $0x8] sm:$0x3] %v965_v0  ;;  %90 = vst [vmem:[#allocation5 + $0xa] sm:$0x3] %v965_v0  ;;  %v123_v16 = vand.u32 2147483647, %v1018_v7 }
  0x36   :  { %91 = vst [vmem:[#allocation5 + $0xc] sm:$0x3] %v965_v0  ;;  %92 = vst [vmem:[#allocation5 + $0xe] sm:$0x3] %v965_v0  ;;  %v124_v17 = vand.u32 2147483647, %v1020_v8 }
  0x37   :  { %93 = vst [vmem:[#allocation6] sm:$0x3] %v965_v0  ;;  %94 = vst [vmem:[#allocation6 + $0x2] sm:$0x3] %v965_v0  ;;  %v125_v19 = vsub.f32 0.0, %v117_v10  ;;  %v126_v20 = vsub.f32 0.0, %v118_v11 }
  0x38   :  { %95 = vst [vmem:[#allocation6 + $0x4] sm:$0x3] %v965_v0  ;;  %96 = vst [vmem:[#allocation6 + $0x6] sm:$0x3] %v965_v0  ;;  %v127_v21 = vsub.f32 0.0, %v119_v12  ;;  %v128_v22 = vsub.f32 0.0, %v120_v13 }
  0x39   :  { %97 = vst [vmem:[#allocation6 + $0x8] sm:$0x3] %v965_v0  ;;  %98 = vst [vmem:[#allocation6 + $0xa] sm:$0x3] %v965_v0  ;;  %v129_v23 = vsub.f32 0.0, %v121_v14  ;;  %v130_v24 = vsub.f32 0.0, %v122_v15 }
  0x3a   :  { %99 = vst [vmem:[#allocation6 + $0xc] sm:$0x3] %v965_v0  ;;  %100 = vst [vmem:[#allocation6 + $0xe] sm:$0x3] %v965_v0  ;;  %v131_v25 = vsub.f32 0.0, %v123_v16  ;;  %v132_v29 = vsub.f32 0.0, %v124_v17 }
  0x3b   :  { %v133_v26 = vmul.f32 1.442695, %v125_v19  ;;  %v135_v27 = vmul.f32 1.442695, %v126_v20  ;;  %v137_v28 = vmul.f32 1.442695, %v127_v21 }
  0x3c   :  { %v139_v30 = vmul.f32 1.442695, %v128_v22  ;;  %v141_v31 = vmul.f32 1.442695, %v129_v23  ;;  %v143_v32 = vmul.f32 1.442695, %v130_v24 }
  0x3d   :  { %841 = vpow2.f32 %v133_v26  ;;  %v1036_v33 = vld [vmem:[#allocation10] sm:$0x3]  ;;  %v145_v34 = vmul.f32 1.442695, %v131_v25  ;;  %v1038_v35 = vld [vmem:[#allocation10 + $0x2] sm:$0x3] }
  0x3e   :  { %843 = vpow2.f32 %v135_v27  ;;  %v1040_v36 = vld [vmem:[#allocation10 + $0x4] sm:$0x3]  ;;  %v1042_v37 = vld [vmem:[#allocation10 + $0x6] sm:$0x3]  ;;  %v147_v38 = vmul.f32 1.442695, %v132_v29  ;;  %v1060_v59 = vmul.f32 %v1036_v33, %v1006_v1  ;;  %v1064_v60 = vmul.f32 %v1038_v35, %v1008_v2 }
  0x3f   :  { %845 = vpow2.f32 %v137_v28  ;;  %v1044_v39 = vld [vmem:[#allocation10 + $0x8] sm:$0x3]  ;;  %v1046_v40 = vld [vmem:[#allocation10 + $0xa] sm:$0x3]  ;;  %v1048_v41 = vld [vmem:[#allocation10 + $0xc] sm:$0x3]  ;;  %v1068_v63 = vmul.f32 %v1040_v36, %v1010_v3  ;;  %v1072_v0 = vmul.f32 %v1042_v37, %v1012_v4 }
  0x40   :  { %847 = vpow2.f32 %v139_v30  ;;  %v301_v42 = vld [vmem:[#allocation4] sm:$0x3]  ;;  %v302_v43 = vld [vmem:[#allocation4 + $0x2] sm:$0x3]  ;;  %v303_v44 = vld [vmem:[#allocation4 + $0x4] sm:$0x3]  ;;  %v1076_v10 = vmul.f32 %v1044_v39, %v1014_v5 }
  0x41   :  { %849 = vpow2.f32 %v141_v31  ;;  %v304_v45 = vld [vmem:[#allocation4 + $0x6] sm:$0x3]  ;;  %v309_v46 = vadd.f32 %v301_v42, %v1036_v33  ;;  %v305_v47 = vld [vmem:[#allocation4 + $0x8] sm:$0x3]  ;;  %v306_v48 = vld [vmem:[#allocation4 + $0xa] sm:$0x3]  ;;  %v310_v50 = vadd.f32 %v302_v43, %v1038_v35  ;;  %v311_v51 = vadd.f32 %v303_v44, %v1040_v36 }
  0x42   :  { %851 = vpow2.f32 %v143_v32  ;;  %v307_v49 = vld [vmem:[#allocation4 + $0xc] sm:$0x3]  ;;  %v312_v52 = vadd.f32 %v304_v45, %v1042_v37  ;;  %v308_v53 = vld [vmem:[#allocation4 + $0xe] sm:$0x3]  ;;  %v313_v54 = vadd.f32 %v305_v47, %v1044_v39  ;;  %v314_v55 = vadd.f32 %v306_v48, %v1046_v40  ;;  %s966_s1 = smov [#allocation12]  }
  0x43   :  { %853 = vpow2.f32 %v145_v34  ;;  %v315_v56 = vadd.f32 %v307_v49, %v1048_v41  ;;  %317 = vst [vmem:[#allocation4] sm:$0x3] %v309_v46  ;;  %v316_v57 = vadd.f32 %v308_v53, %v1022_v9  ;;  %318 = vst [vmem:[#allocation4 + $0x2] sm:$0x3] %v310_v50  ;;  %v149_v12 = vmax.f32 %v1006_v1, 0.0  ;;  %s821_s6 = sshll.u32 %s966_s1, 4  ;;  %s822_s6 = int_to_ptr.vmem [resolvable:$true] %s821_s6 }
  0x44   :  { %855 = vpow2.f32 %v147_v38  ;;  %319 = vst [vmem:[#allocation4 + $0x4] sm:$0x3] %v311_v51  ;;  %320 = vst [vmem:[#allocation4 + $0x6] sm:$0x3] %v312_v52  ;;  %v150_v13 = vmax.f32 %v1008_v2, 0.0  ;;  %v151_v14 = vmax.f32 %v1010_v3, 0.0  ;;  %v1088_v31 = vmul.f32 %v1046_v40, %v1016_v6  ;;  %p938_p3 = scmp.lt.s32.totalorder %s822_s6, %s822_s6 }
  0x45   :  { %321 = vst [vmem:[#allocation4 + $0x8] sm:$0x3] %v313_v54  ;;  %322 = vst [vmem:[#allocation4 + $0xa] sm:$0x3] %v314_v55  ;;  %v152_v17 = vmax.f32 %v1012_v4, 0.0  ;;  %v153_v19 = vmax.f32 %v1014_v5, 0.0  ;;  %v1092_v44 = vmul.f32 %v1048_v41, %v1018_v7 }
  0x46   :  { %323 = vst [vmem:[#allocation4 + $0xc] sm:$0x3] %v315_v56  ;;  %324 = vst [vmem:[#allocation4 + $0xe] sm:$0x3] %v316_v57  ;;  %v154_v22 = vmax.f32 %v1016_v6, 0.0  ;;  %v155_v23 = vmax.f32 %v1018_v7, 0.0 }
  0x47   :  { %v842_v58 = vpop.eup %841  ;;  %v156_v46 = vmax.f32 %v1020_v8, 0.0  ;;  %vm451_vm1 = vcmask 1041409   ;;  %vm453_vm2 = vcmask 1042434   ;;  %vm455_vm3 = vcmask 1043459   ;;  %s933_s7 = scalar_lea.vmem %s822_s6, 128 }
  0x48   :  { %v844_v61 = vpop.eup %843  ;;  %v157_v62 = vadd.f32 1.0, %v842_v58  ;;  %vm457_vm4 = vcmask 1044484   ;;  %vm459_vm5 = vcmask 1045509   ;;  %vm461_vm6 = vcmask 1046534   ;;  %p934_p2 = scmp.ne.s32.totalorder %s822_s6, %s933_s7  ;;  %p939_p4 = scmp.lt.s32.totalorder %s933_s7, %s933_s7 }
  0x49   :  { %v846_v11 = vpop.eup %845  ;;  %v158_v15 = vadd.f32 1.0, %v844_v61  ;;  %vm463_vm7 = vcmask 1047559  }
  0x4a   :  { %v848_v16 = vpop.eup %847  ;;  %v159_v20 = vadd.f32 1.0, %v846_v11  ;;  %857 = vlog2.f32 %v157_v62  ;;  %v556_v25 = vld [vmem:[#allocation4] sm:$0x3]  ;;  %v557_v28 = vld [vmem:[#allocation4 + $0x2] sm:$0x3]  ;;  %p940_p5 = por %p939_p4, %p938_p3 }
  0x4b   :  { %v850_v21 = vpop.eup %849  ;;  %v160_v24 = vadd.f32 1.0, %v848_v16  ;;  %859 = vlog2.f32 %v158_v15  ;;  %v558_v29 = vld [vmem:[#allocation4 + $0x4] sm:$0x3]  ;;  %v564_v30 = vsel %vm386_vm0, %v556_v25, 0.0  ;;  %v559_v38 = vld [vmem:[#allocation4 + $0x6] sm:$0x3] }
  0x4c   :  { %v852_v26 = vpop.eup %851  ;;  %v161_v27 = vadd.f32 1.0, %v850_v21  ;;  %861 = vlog2.f32 %v159_v20  ;;  %v560_v42 = vld [vmem:[#allocation4 + $0x8] sm:$0x3]  ;;  %v565_v43 = vrot.slane %v564_v30, 4  ;;  %v571_v48 = vsel %vm386_vm0, %v557_v28, 0.0  ;;  %p941_p6 = pnand %p940_p5, %p934_p2 }
  0x4d   :  { %v854_v32 = vpop.eup %853  ;;  %v162_v34 = vadd.f32 1.0, %v852_v26  ;;  %863 = vlog2.f32 %v160_v24  ;;  %v561_v50 = vld [vmem:[#allocation4 + $0xa] sm:$0x3]  ;;  %v562_v51 = vld [vmem:[#allocation4 + $0xc] sm:$0x3]  ;;  %v572_v53 = vrot.slane %v571_v48, 4 }
  0x4e   :  { %v856_v45 = vpop.eup %855  ;;  %v163_v47 = vadd.f32 1.0, %v854_v32  ;;  %865 = vlog2.f32 %v161_v27  ;;  %v566_v52 = vadd.f32 %v565_v43, %v564_v30  ;;  %v578_v54 = vsel %vm386_vm0, %v558_v29, 0.0  ;;  %v563_v57 = vld [vmem:[#allocation4 + $0xe] sm:$0x3] }
  0x4f   :  { %v164_v49 = vadd.f32 1.0, %v856_v45  ;;  %867 = vlog2.f32 %v162_v34  ;;  %v585_v55 = vsel %vm386_vm0, %v559_v38, 0.0  ;;  %v592_v56 = vsel %vm386_vm0, %v560_v42, 0.0 }
  0x50   :  { %869 = vlog2.f32 %v163_v47  ;;  %v567_v58 = vrot.slane %v566_v52, 2  ;;  %v573_v61 = vadd.f32 %v572_v53, %v571_v48  ;;  %v579_v62 = vrot.slane %v578_v54, 4 }
  0x51   :  { %871 = vlog2.f32 %v164_v49  ;;  %v586_v11 = vrot.slane %v585_v55, 4  ;;  %v593_v15 = vrot.slane %v592_v56, 4  ;;  %v599_v16 = vsel %vm386_vm0, %v561_v50, 0.0 }
  0x52   :  { %v1101_v20 = vsel %vm386_vm0, %v562_v51, 0.0  ;;  %v568_v21 = vadd.f32 %v567_v58, %v566_v52  ;;  %v574_v24 = vrot.slane %v573_v61, 2  ;;  %v580_v25 = vadd.f32 %v579_v62, %v578_v54 }
  0x53   :  { %v600_v26 = vrot.slane %v599_v16, 4  ;;  %v587_v28 = vadd.f32 %v586_v11, %v585_v55  ;;  %v1103_v29 = vadd.f32 %v593_v15, %v592_v56  ;;  %v607_v30 = vrot.slane %v1101_v20, 4 }
  0x54   :  { %v858_v27 = vpop.eup %857  ;;  %v1107_v32 = vsel %vm386_vm0, %v563_v57, 0.0  ;;  %v569_v42 = vrot.slane %v568_v21, 1  ;;  %v575_v43 = vadd.f32 %v574_v24, %v573_v61  ;;  %v581_v45 = vrot.slane %v580_v25, 2 }
  0x55   :  { %v860_v34 = vpop.eup %859  ;;  %v166_v38 = vmul.f32 0.6931472, %v858_v27  ;;  %v588_v49 = vrot.slane %v587_v28, 2  ;;  %v595_v50 = vrot.slane %v1103_v29, 2  ;;  %v601_v51 = vadd.f32 %v600_v26, %v599_v16 }
  0x56   :  { %v862_v47 = vpop.eup %861  ;;  %v168_v48 = vmul.f32 0.6931472, %v860_v34  ;;  %v1114_v55 = vadd.f32 %v569_v42, %v568_v21  ;;  %v576_v56 = vrot.slane %v575_v43, 1  ;;  %v582_v62 = vadd.f32 %v581_v45, %v580_v25 }
  0x57   :  { %v864_v52 = vpop.eup %863  ;;  %v170_v53 = vmul.f32 0.6931472, %v862_v47  ;;  %v1112_v54 = vadd.f32 %v166_v38, %v149_v12  ;;  %v589_v11 = vadd.f32 %v588_v49, %v587_v28 }
  0x58   :  { %v866_v57 = vpop.eup %865  ;;  %v172_v58 = vmul.f32 0.6931472, %v864_v52  ;;  %v1118_v61 = vadd.f32 %v168_v48, %v150_v13  ;;  %v577_v21 = vadd.f32 %v576_v56, %v575_v43  ;;  %v583_v25 = vrot.slane %v582_v62, 1 }
  0x59   :  { %v868_v15 = vpop.eup %867  ;;  %v174_v24 = vmul.f32 0.6931472, %v866_v57  ;;  %v1122_v16 = vadd.f32 %v170_v53, %v151_v14  ;;  %v189_v12 = vsub.f32 %v1006_v1, %v1112_v54  ;;  %v602_v57 = vrot.slane %v601_v51, 2 }
  0x5a   :  { %v870_v26 = vpop.eup %869  ;;  %v176_v27 = vmul.f32 0.6931472, %v868_v15  ;;  %v1128_v34 = vadd.f32 %v172_v58, %v152_v17  ;;  %v190_v13 = vsub.f32 %v1008_v2, %v1118_v61  ;;  %v584_v52 = vadd.f32 %v583_v25, %v582_v62  ;;  %v278_v25 = vld [vmem:[#allocation3 + $0x2] sm:$0x3] }
  0x5b   :  { %v872_v28 = vpop.eup %871  ;;  %v178_v38 = vmul.f32 0.6931472, %v870_v26  ;;  %v1134_v14 = vadd.f32 %v174_v24, %v153_v19  ;;  %v191_v1 = vsub.f32 %v1010_v3, %v1122_v16  ;;  %v197_v42 = vmul.f32 1.442695, %v189_v12 }
  0x5c   :  { %v180_v43 = vmul.f32 0.6931472, %v872_v28  ;;  %v1140_v17 = vadd.f32 %v176_v27, %v154_v22  ;;  %v192_v2 = vsub.f32 %v1012_v4, %v1128_v34  ;;  %v199_v45 = vmul.f32 1.442695, %v190_v13 }
  0x5d   :  { %v1146_v47 = vadd.f32 %v178_v38, %v155_v23  ;;  %v193_v19 = vsub.f32 %v1014_v5, %v1134_v14  ;;  %873 = vpow2.f32 %v197_v42  ;;  %v201_v3 = vmul.f32 1.442695, %v191_v1  ;;  %v253_v38 = vld [vmem:[#allocation2] sm:$0x3] }
  0x5e   :  { %v1152_v48 = vadd.f32 %v180_v43, %v156_v46  ;;  %v194_v22 = vsub.f32 %v1016_v6, %v1140_v17  ;;  %875 = vpow2.f32 %v199_v45  ;;  %v203_v4 = vmul.f32 1.442695, %v192_v2  ;;  %v279_v43 = vld [vmem:[#allocation3 + $0x4] sm:$0x3] }
  0x5f   :  { %v195_v23 = vsub.f32 %v1018_v7, %v1146_v47  ;;  %877 = vpow2.f32 %v201_v3  ;;  %v205_v49 = vmul.f32 1.442695, %v193_v19  ;;  %v590_v46 = vrot.slane %v589_v11, 1  ;;  %v254_v3 = vld [vmem:[#allocation2 + $0x2] sm:$0x3] }
  0x60   :  { %v196_v5 = vsub.f32 %v1020_v8, %v1152_v48  ;;  %879 = vpow2.f32 %v203_v4  ;;  %v207_v53 = vmul.f32 1.442695, %v194_v22  ;;  %v596_v6 = vadd.f32 %v595_v50, %v1103_v29  ;;  %v280_v4 = vld [vmem:[#allocation3 + $0x6] sm:$0x3] }
  0x61   :  { %881 = vpow2.f32 %v205_v49  ;;  %v209_v56 = vmul.f32 1.442695, %v195_v23  ;;  %v591_v15 = vadd.f32 %v590_v46, %v589_v11  ;;  %v608_v7 = vadd.f32 %v607_v30, %v1101_v20  ;;  %v277_v30 = vld [vmem:[#allocation3] sm:$0x3] }
  0x62   :  { %883 = vpow2.f32 %v207_v53  ;;  %v211_v58 = vmul.f32 1.442695, %v196_v5  ;;  %v597_v62 = vrot.slane %v596_v6, 1  ;;  %v603_v8 = vadd.f32 %v602_v57, %v601_v51  ;;  %v255_v53 = vld [vmem:[#allocation2 + $0x4] sm:$0x3] }
  0x63   :  { %885 = vpow2.f32 %v209_v56  ;;  %v614_v24 = vrot.slane %v1107_v32, 4  ;;  %v609_v12 = vrot.slane %v608_v7, 2  ;;  %v628_v26 = vsel %vm451_vm1, %v577_v21, %v1114_v55 }
  0x64   :  { %887 = vpow2.f32 %v211_v58  ;;  %v1169_v29 = vmul.f32 %v1112_v54, %v1036_v33  ;;  %v598_v50 = vadd.f32 %v597_v62, %v596_v6  ;;  %v604_v11 = vrot.slane %v603_v8, 1  ;;  %v281_v6 = vld [vmem:[#allocation3 + $0x8] sm:$0x3] }
  0x65   :  { %v615_v27 = vadd.f32 %v614_v24, %v1107_v32  ;;  %v629_v20 = vsel %vm453_vm2, %v584_v52, %v628_v26  ;;  %v610_v51 = vadd.f32 %v609_v12, %v608_v7  ;;  %v1176_v28 = vmul.f32 %v1118_v61, %v1038_v35 }
  0x66   :  { %v630_v13 = vsel %vm455_vm3, %v591_v15, %v629_v20  ;;  %v1180_v55 = vmul.f32 %v1122_v16, %v1040_v36  ;;  %v605_v1 = vadd.f32 %v604_v11, %v603_v8  ;;  %v1185_v2 = vmul.f32 %v1128_v34, %v1042_v37  ;;  %v256_v15 = vld [vmem:[#allocation2 + $0x6] sm:$0x3]  ;;  %v282_v8 = vld [vmem:[#allocation3 + $0xa] sm:$0x3] }
  0x67   :  { %v874_v21 = vpop.eup %873  ;;  %v616_v32 = vrot.slane %v615_v27, 2  ;;  %v631_v42 = vsel %vm457_vm4, %v598_v50, %v630_v13  ;;  %v611_v22 = vrot.slane %v610_v51, 1  ;;  %v1190_v49 = vmul.f32 %v1134_v14, %v1044_v39  ;;  %v257_v50 = vld [vmem:[#allocation2 + $0x8] sm:$0x3] }
  0x68   :  { %v876_v45 = vpop.eup %875  ;;  %v221_v19 = vmul.f32 %v874_v21, %v1036_v33  ;;  %v285_v23 = vadd.f32 %v874_v21, %v277_v30  ;;  %v632_v56 = vsel %vm459_vm5, %v605_v1, %v631_v42  ;;  %v284_v21 = vld [vmem:[#allocation3 + $0xe] sm:$0x3] }
  0x69   :  { %v878_v52 = vpop.eup %877  ;;  %v222_v5 = vmul.f32 %v876_v45, %v1038_v35  ;;  %v617_v46 = vadd.f32 %v616_v32, %v615_v27  ;;  %v286_v57 = vadd.f32 %v876_v45, %v278_v25  ;;  %v612_v62 = vadd.f32 %v611_v22, %v610_v51  ;;  %v283_v27 = vld [vmem:[#allocation3 + $0xc] sm:$0x3]  ;;  %v258_v25 = vld [vmem:[#allocation2 + $0xa] sm:$0x3]  ;;  %v259_v32 = vld [vmem:[#allocation2 + $0xc] sm:$0x3] }
  0x6a   :  { %v880_v58 = vpop.eup %879  ;;  %v223_v33 = vmul.f32 %v878_v52, %v1040_v36  ;;  %v261_v7 = vadd.f32 %v253_v38, %v221_v19  ;;  %v287_v24 = vadd.f32 %v878_v52, %v279_v43  ;;  %293 = vst [vmem:[#allocation3] sm:$0x3] %v285_v23  ;;  %v1202_v23 = vmul.f32 %v1140_v17, %v1046_v40 }
  0x6b   :  { %v882_v12 = vpop.eup %881  ;;  %v224_v26 = vmul.f32 %v880_v58, %v1042_v37  ;;  %v262_v35 = vadd.f32 %v254_v3, %v222_v5  ;;  %v618_v11 = vrot.slane %v617_v46, 1  ;;  %v288_v20 = vadd.f32 %v880_v58, %v280_v4  ;;  %294 = vst [vmem:[#allocation3 + $0x2] sm:$0x3] %v286_v57  ;;  %v260_v3 = vld [vmem:[#allocation2 + $0xe] sm:$0x3] }
  0x6c   :  { %v884_v30 = vpop.eup %883  ;;  %v225_v13 = vmul.f32 %v882_v12, %v1044_v39  ;;  %v263_v36 = vadd.f32 %v255_v53, %v223_v33  ;;  %269 = vst [vmem:[#allocation2] sm:$0x3] %v261_v7  ;;  %v633_v51 = vsel %vm461_vm6, %v612_v62, %v632_v56  ;;  %v289_v38 = vadd.f32 %v882_v12, %v281_v6  ;;  %v325_v58 = vld [vmem:[#allocation5] sm:$0x3] }
  0x6d   :  { %295 = vst [vmem:[#allocation3 + $0x4] sm:$0x3] %v287_v24  ;;  %v886_v1 = vpop.eup %885  ;;  %v226_v37 = vmul.f32 %v884_v30, %v1046_v40  ;;  %v264_v42 = vadd.f32 %v256_v15, %v224_v26  ;;  %270 = vst [vmem:[#allocation2 + $0x2] sm:$0x3] %v262_v35  ;;  %v619_v43 = vadd.f32 %v618_v11, %v617_v46 }
  0x6e   :  { %v290_v45 = vadd.f32 %v884_v30, %v282_v8  ;;  %296 = vst [vmem:[#allocation3 + $0x6] sm:$0x3] %v288_v20  ;;  %v888_v19 = vpop.eup %887  ;;  %v227_v39 = vmul.f32 %v886_v1, %v1048_v41  ;;  %v265_v22 = vadd.f32 %v257_v50, %v225_v13  ;;  %271 = vst [vmem:[#allocation2 + $0x4] sm:$0x3] %v263_v36  ;;  %v326_v8 = vld [vmem:[#allocation5 + $0x2] sm:$0x3] }
  0x6f   :  { %v291_v4 = vadd.f32 %v886_v1, %v283_v27  ;;  %297 = vst [vmem:[#allocation3 + $0x8] sm:$0x3] %v289_v38  ;;  %v228_v52 = vmul.f32 %v888_v19, %v1022_v9  ;;  %v266_v5 = vadd.f32 %v258_v25, %v226_v37  ;;  %272 = vst [vmem:[#allocation2 + $0x6] sm:$0x3] %v264_v42  ;;  %v328_v50 = vld [vmem:[#allocation5 + $0x6] sm:$0x3] }
  0x70   :  { %v634_v53 = vsel %vm463_vm7, %v619_v43, %v633_v51  ;;  %v292_v46 = vadd.f32 %v888_v19, %v284_v21  ;;  %298 = vst [vmem:[#allocation3 + $0xa] sm:$0x3] %v290_v45  ;;  %v267_v56 = vadd.f32 %v259_v32, %v227_v39  ;;  %273 = vst [vmem:[#allocation2 + $0x8] sm:$0x3] %v265_v22  ;;  %v329_v27 = vld [vmem:[#allocation5 + $0x8] sm:$0x3] }
  0x71   :  { %636 = vadd.xlane.f32.xlu1 %v634_v53  ;;  %299 = vst [vmem:[#allocation3 + $0xc] sm:$0x3] %v291_v4  ;;  %v1208_v6 = vmul.f32 %v1146_v47, %v1048_v41  ;;  %v1212_v40 = vmul.f32 %v1152_v48, %v1022_v9  ;;  %v237_v57 = vsub.f32 %v1169_v29, %v1060_v59  ;;  %274 = vst [vmem:[#allocation2 + $0xa] sm:$0x3] %v266_v5  ;;  %v471_v15 = vld [vmem:[#allocation3] sm:$0x3] }
  0x72   :  { %v268_v33 = vadd.f32 %v260_v3, %v228_v52  ;;  %300 = vst [vmem:[#allocation3 + $0xe] sm:$0x3] %v292_v46  ;;  %v238_v7 = vsub.f32 %v1176_v28, %v1064_v60  ;;  %v239_v62 = vsub.f32 %v1180_v55, %v1068_v63  ;;  %v240_v41 = vsub.f32 %v1185_v2, %v1072_v0  ;;  %v327_v9 = vld [vmem:[#allocation5 + $0x4] sm:$0x3]  ;;  %v472_v24 = vld [vmem:[#allocation3 + $0x2] sm:$0x3] }
  0x73   :  { %275 = vst [vmem:[#allocation2 + $0xc] sm:$0x3] %v267_v56  ;;  %v479_v59 = vsel %vm386_vm0, %v471_v15, 0.0  ;;  %v241_v12 = vsub.f32 %v1190_v49, %v1076_v10  ;;  %v242_v26 = vsub.f32 %v1202_v23, %v1088_v31  ;;  %v243_v60 = vsub.f32 %v1208_v6, %v1092_v44  ;;  %v378_v63 = vld [vmem:[#allocation2] sm:$0x3] }
  0x74   :  { %276 = vst [vmem:[#allocation2 + $0xe] sm:$0x3] %v268_v33  ;;  %v480_v35 = vrot.slane %v479_v59, 4  ;;  %v486_v0 = vsel %vm386_vm0, %v472_v24, 0.0  ;;  %v244_v11 = vsub.f32 %v1212_v40, %v1034_v18  ;;  %v333_v20 = vadd.f32 %v325_v58, %v237_v57  ;;  %v379_v30 = vld [vmem:[#allocation2 + $0x2] sm:$0x3] }
  0x75   :  { %v387_v10 = vsel %vm386_vm0, %v378_v63, 0.0  ;;  %v487_v13 = vrot.slane %v486_v0, 4  ;;  %v330_v25 = vld [vmem:[#allocation5 + $0xa] sm:$0x3]  ;;  %v334_v31 = vadd.f32 %v326_v8, %v238_v7  ;;  %v335_v36 = vadd.f32 %v327_v9, %v239_v62  ;;  %v380_v51 = vld [vmem:[#allocation2 + $0x4] sm:$0x3] }
  0x76   :  { %v388_v44 = vrot.slane %v387_v10, 4  ;;  %v394_v21 = vsel %vm386_vm0, %v379_v30, 0.0  ;;  %v1234_v38 = vadd.f32 %v480_v35, %v479_v59  ;;  %v331_v1 = vld [vmem:[#allocation5 + $0xc] sm:$0x3]  ;;  %v336_v37 = vadd.f32 %v328_v50, %v240_v41  ;;  %341 = vst [vmem:[#allocation5] sm:$0x3] %v333_v20 }
  0x77   :  { %v381_v32 = vld [vmem:[#allocation2 + $0x6] sm:$0x3]  ;;  %v395_v42 = vrot.slane %v394_v21, 4  ;;  %v401_v43 = vsel %vm386_vm0, %v380_v51, 0.0  ;;  %v1237_v45 = vadd.f32 %v487_v13, %v486_v0  ;;  %v337_v19 = vadd.f32 %v329_v27, %v241_v12  ;;  %342 = vst [vmem:[#allocation5 + $0x2] sm:$0x3] %v334_v31 }
  0x78   :  { %343 = vst [vmem:[#allocation5 + $0x4] sm:$0x3] %v335_v36  ;;  %v382_v39 = vld [vmem:[#allocation2 + $0x8] sm:$0x3]  ;;  %v389_v3 = vadd.f32 %v388_v44, %v387_v10  ;;  %v402_v22 = vrot.slane %v401_v43, 4  ;;  %v408_v4 = vsel %vm386_vm0, %v381_v32, 0.0  ;;  %v338_v52 = vadd.f32 %v330_v25, %v242_v26 }
  0x79   :  { %344 = vst [vmem:[#allocation5 + $0x6] sm:$0x3] %v336_v37  ;;  %v383_v5 = vld [vmem:[#allocation2 + $0xa] sm:$0x3]  ;;  %v396_v53 = vadd.f32 %v395_v42, %v394_v21  ;;  %v409_v46 = vrot.slane %v408_v4, 4  ;;  %v415_v56 = vsel %vm386_vm0, %v382_v39, 0.0  ;;  %v339_v57 = vadd.f32 %v331_v1, %v243_v60 }
  0x7a   :  { %345 = vst [vmem:[#allocation5 + $0x8] sm:$0x3] %v337_v19  ;;  %v384_v58 = vld [vmem:[#allocation2 + $0xc] sm:$0x3]  ;;  %v390_v33 = vrot.slane %v389_v3, 2  ;;  %v403_v15 = vadd.f32 %v402_v22, %v401_v43  ;;  %v416_v7 = vrot.slane %v415_v56, 4 }
  0x7b   :  { %v422_v62 = vsel %vm386_vm0, %v383_v5, 0.0  ;;  %346 = vst [vmem:[#allocation5 + $0xa] sm:$0x3] %v338_v52  ;;  %v385_v41 = vld [vmem:[#allocation2 + $0xe] sm:$0x3]  ;;  %v397_v8 = vrot.slane %v396_v53, 2  ;;  %v410_v9 = vadd.f32 %v409_v46, %v408_v4 }
  0x7c   :  { %v423_v24 = vrot.slane %v422_v62, 4  ;;  %v429_v59 = vsel %vm386_vm0, %v384_v58, 0.0  ;;  %347 = vst [vmem:[#allocation5 + $0xc] sm:$0x3] %v339_v57  ;;  %v391_v12 = vadd.f32 %v390_v33, %v389_v3  ;;  %v404_v26 = vrot.slane %v403_v15, 2 }
  0x7d   :  { %v417_v50 = vadd.f32 %v416_v7, %v415_v56  ;;  %v430_v63 = vrot.slane %v429_v59, 4  ;;  %v398_v60 = vadd.f32 %v397_v8, %v396_v53  ;;  %v411_v35 = vrot.slane %v410_v9, 2  ;;  %v473_v56 = vld [vmem:[#allocation3 + $0x4] sm:$0x3]  ;;  %v474_v8 = vld [vmem:[#allocation3 + $0x6] sm:$0x3] }
  0x7e   :  { %v424_v0 = vadd.f32 %v423_v24, %v422_v62  ;;  %v436_v27 = vsel %vm386_vm0, %v385_v41, 0.0  ;;  %v392_v20 = vrot.slane %v391_v12, 1  ;;  %v405_v30 = vadd.f32 %v404_v26, %v403_v15  ;;  %v476_v26 = vld [vmem:[#allocation3 + $0xa] sm:$0x3] }
  0x7f   :  { %v418_v10 = vrot.slane %v417_v50, 2  ;;  %v431_v13 = vadd.f32 %v430_v63, %v429_v59  ;;  %v399_v25 = vrot.slane %v398_v60, 1  ;;  %v412_v31 = vadd.f32 %v411_v35, %v410_v9  ;;  %v475_v9 = vld [vmem:[#allocation3 + $0x8] sm:$0x3] }
  0x80   :  { %v425_v36 = vrot.slane %v424_v0, 2  ;;  %v437_v51 = vrot.slane %v436_v27, 4  ;;  %v393_v44 = vadd.f32 %v392_v20, %v391_v12  ;;  %v406_v21 = vrot.slane %v405_v30, 1 }
  0x81   :  { %v419_v1 = vadd.f32 %v418_v10, %v417_v50  ;;  %v432_v37 = vrot.slane %v431_v13, 2  ;;  %v400_v32 = vadd.f32 %v399_v25, %v398_v60  ;;  %v413_v42 = vrot.slane %v412_v31, 1 }
  0x82   :  { %v426_v43 = vadd.f32 %v425_v36, %v424_v0  ;;  %v438_v19 = vadd.f32 %v437_v51, %v436_v27  ;;  %v407_v39 = vadd.f32 %v406_v21, %v405_v30  ;;  %v482_v4 = vrot.slane %v1234_v38, 2  ;;  %v477_v0 = vld [vmem:[#allocation3 + $0xc] sm:$0x3] }
  0x83   :  { %v420_v3 = vrot.slane %v419_v1, 1  ;;  %v433_v22 = vadd.f32 %v432_v37, %v431_v13  ;;  %v414_v52 = vadd.f32 %v413_v42, %v412_v31  ;;  %v452_v46 = vsel %vm451_vm1, %v400_v32, %v393_v44 }
  0x84   :  { %v427_v5 = vrot.slane %v426_v43, 1  ;;  %v439_v53 = vrot.slane %v438_v19, 2  ;;  %v454_v33 = vsel %vm453_vm2, %v407_v39, %v452_v46  ;;  %v483_v15 = vadd.f32 %v482_v4, %v1234_v38  ;;  %v478_v38 = vld [vmem:[#allocation3 + $0xe] sm:$0x3] }
  0x85   :  { %v421_v57 = vadd.f32 %v420_v3, %v419_v1  ;;  %v434_v58 = vrot.slane %v433_v22, 1  ;;  %v456_v41 = vsel %vm455_vm3, %v414_v52, %v454_v33  ;;  %v489_v24 = vrot.slane %v1237_v45, 2  ;;  %v641_v3 = vld [vmem:[#allocation5] sm:$0x3] }
  0x86   :  { %v428_v7 = vadd.f32 %v427_v5, %v426_v43  ;;  %v440_v62 = vadd.f32 %v439_v53, %v438_v19  ;;  %v484_v50 = vrot.slane %v483_v15, 1  ;;  %v493_v63 = vsel %vm386_vm0, %v473_v56, 0.0  ;;  %v642_v53 = vld [vmem:[#allocation5 + $0x2] sm:$0x3] }
  0x87   :  { %v435_v59 = vadd.f32 %v434_v58, %v433_v22  ;;  %v458_v12 = vsel %vm457_vm4, %v421_v57, %v456_v41  ;;  %v490_v27 = vadd.f32 %v489_v24, %v1237_v45  ;;  %v494_v20 = vrot.slane %v493_v63, 4  ;;  %v332_v45 = vld [vmem:[#allocation5 + $0xe] sm:$0x3] }
  0x88   :  { %v441_v60 = vrot.slane %v440_v62, 1  ;;  %v460_v35 = vsel %vm459_vm5, %v428_v7, %v458_v12  ;;  %v485_v10 = vadd.f32 %v484_v50, %v483_v15  ;;  %v500_v13 = vsel %vm386_vm0, %v474_v8, 0.0 }
  0x89   :  { %v462_v30 = vsel %vm461_vm6, %v435_v59, %v460_v35  ;;  %v507_v25 = vsel %vm386_vm0, %v475_v9, 0.0  ;;  %v491_v36 = vrot.slane %v490_v27, 1  ;;  %v495_v51 = vadd.f32 %v494_v20, %v493_v63  ;;  %v643_v20 = vld [vmem:[#allocation5 + $0x4] sm:$0x3] }
  0x8a   :  { %v442_v31 = vadd.f32 %v441_v60, %v440_v62  ;;  %v501_v44 = vrot.slane %v500_v13, 4  ;;  %v508_v21 = vrot.slane %v507_v25, 4  ;;  %v514_v1 = vsel %vm386_vm0, %v476_v26, 0.0 }
  0x8b   :  { %v521_v37 = vsel %vm386_vm0, %v477_v0, 0.0  ;;  %v528_v32 = vsel %vm386_vm0, %v478_v38, 0.0  ;;  %v492_v43 = vadd.f32 %v491_v36, %v490_v27  ;;  %v496_v19 = vrot.slane %v495_v51, 2 }
  0x8c   :  { %v464_v42 = vsel %vm463_vm7, %v442_v31, %v462_v30  ;;  %v502_v39 = vadd.f32 %v501_v44, %v500_v13  ;;  %v509_v22 = vadd.f32 %v508_v21, %v507_v25  ;;  %v515_v4 = vrot.slane %v514_v1, 4  ;;  %v644_v13 = vld [vmem:[#allocation5 + $0x6] sm:$0x3] }
  0x8d   :  { %466 = vadd.xlane.f32.xlu0 %v464_v42  ;;  %v522_v52 = vrot.slane %v521_v37, 4  ;;  %v529_v5 = vrot.slane %v528_v32, 4  ;;  %v497_v46 = vadd.f32 %v496_v19, %v495_v51  ;;  %v543_v57 = vsel %vm451_vm1, %v492_v43, %v485_v10 }
  0x8e   :  { %v503_v56 = vrot.slane %v502_v39, 2  ;;  %v340_v58 = vadd.f32 %v332_v45, %v244_v11  ;;  %v510_v33 = vrot.slane %v509_v22, 2  ;;  %v516_v15 = vadd.f32 %v515_v4, %v514_v1  ;;  %v645_v1 = vld [vmem:[#allocation5 + $0x8] sm:$0x3] }
  0x8f   :  { %v523_v7 = vadd.f32 %v522_v52, %v521_v37  ;;  %v530_v62 = vadd.f32 %v529_v5, %v528_v32  ;;  %v498_v41 = vrot.slane %v497_v46, 1  ;;  %v649_v9 = vsel %vm386_vm0, %v641_v3, 0.0  ;;  %v646_v32 = vld [vmem:[#allocation5 + $0xa] sm:$0x3] }
  0x90   :  { %v504_v8 = vadd.f32 %v503_v56, %v502_v39  ;;  %348 = vst [vmem:[#allocation5 + $0xe] sm:$0x3] %v340_v58  ;;  %v656_v24 = vsel %vm386_vm0, %v642_v53, 0.0  ;;  %v511_v59 = vadd.f32 %v510_v33, %v509_v22  ;;  %v517_v12 = vrot.slane %v516_v15, 2  ;;  %v647_v56 = vld [vmem:[#allocation5 + $0xc] sm:$0x3] }
  0x91   :  { %v524_v26 = vrot.slane %v523_v7, 2  ;;  %v531_v50 = vrot.slane %v530_v62, 2  ;;  %v499_v63 = vadd.f32 %v498_v41, %v497_v46  ;;  %v650_v35 = vrot.slane %v649_v9, 4 }
  0x92   :  { %v505_v60 = vrot.slane %v504_v8, 1  ;;  %v657_v18 = vrot.slane %v656_v24, 4  ;;  %v512_v11 = vrot.slane %v511_v59, 1  ;;  %v518_v0 = vadd.f32 %v517_v12, %v516_v15 }
  0x93   :  { %v525_v38 = vadd.f32 %v524_v26, %v523_v7  ;;  %v532_v27 = vadd.f32 %v531_v50, %v530_v62  ;;  %v544_v10 = vsel %vm453_vm2, %v499_v63, %v543_v57  ;;  %v651_v25 = vadd.f32 %v650_v35, %v649_v9 }
  0x94   :  { %v506_v30 = vadd.f32 %v505_v60, %v504_v8  ;;  %v658_v31 = vadd.f32 %v657_v18, %v656_v24  ;;  %v513_v36 = vadd.f32 %v512_v11, %v511_v59  ;;  %v519_v51 = vrot.slane %v518_v0, 1 }
  0x95   :  { %v526_v44 = vrot.slane %v525_v38, 1  ;;  %v533_v21 = vrot.slane %v532_v27, 1  ;;  %v652_v45 = vrot.slane %v651_v25, 2  ;;  %v663_v43 = vsel %vm386_vm0, %v643_v20, 0.0 }
  0x96   :  { %v545_v37 = vsel %vm455_vm3, %v506_v30, %v544_v10  ;;  %v659_v42 = vrot.slane %v658_v31, 2  ;;  %v520_v19 = vadd.f32 %v519_v51, %v518_v0  ;;  %v664_v5 = vrot.slane %v663_v43, 4 }
  0x97   :  { %v527_v39 = vadd.f32 %v526_v44, %v525_v38  ;;  %v534_v3 = vadd.f32 %v533_v21, %v532_v27  ;;  %v546_v22 = vsel %vm457_vm4, %v513_v36, %v545_v37  ;;  %v653_v4 = vadd.f32 %v652_v45, %v651_v25  ;;  %v648_v9 = vld [vmem:[#allocation5 + $0xe] sm:$0x3] }
  0x98   :  { %v660_v52 = vadd.f32 %v659_v42, %v658_v31  ;;  %v670_v53 = vsel %vm386_vm0, %v644_v13, 0.0  ;;  %v547_v46 = vsel %vm459_vm5, %v520_v19, %v546_v22  ;;  %v677_v58 = vsel %vm386_vm0, %v645_v1, 0.0 }
  0x99   :  { %v671_v57 = vrot.slane %v670_v53, 4  ;;  %v684_v33 = vsel %vm386_vm0, %v646_v32, 0.0  ;;  %v548_v15 = vsel %vm461_vm6, %v527_v39, %v547_v46  ;;  %v654_v7 = vrot.slane %v653_v4, 1  ;;  %v353_v46 = vld [vmem:[#allocation6 + $0x8] sm:$0x3] }
  0x9a   :  { %v661_v62 = vrot.slane %v660_v52, 1  ;;  %v665_v41 = vadd.f32 %v664_v5, %v663_v43  ;;  %v549_v8 = vsel %vm463_vm7, %v534_v3, %v548_v15  ;;  %v678_v59 = vrot.slane %v677_v58, 4  ;;  %v351_v5 = vld [vmem:[#allocation6 + $0x4] sm:$0x3]  ;;  %v356_v15 = vld [vmem:[#allocation6 + $0xe] sm:$0x3] }
  0x9b   :  { %v672_v24 = vadd.f32 %v671_v57, %v670_v53  ;;  %v685_v12 = vrot.slane %v684_v33, 4  ;;  %551 = vadd.xlane.f32.xlu0 %v549_v8  ;;  %v655_v26 = vadd.f32 %v654_v7, %v653_v4  ;;  %v691_v60 = vsel %vm386_vm0, %v647_v56, 0.0  ;;  %v354_v56 = vld [vmem:[#allocation6 + $0xa] sm:$0x3] }
  0x9c   :  { %v662_v50 = vadd.f32 %v661_v62, %v660_v52  ;;  %v666_v63 = vrot.slane %v665_v41, 2  ;;  %v679_v18 = vadd.f32 %v678_v59, %v677_v58  ;;  %v692_v0 = vrot.slane %v691_v60, 4 }
  0x9d   :  { %v673_v35 = vrot.slane %v672_v24, 2  ;;  %v686_v11 = vadd.f32 %v685_v12, %v684_v33  ;;  %v698_v27 = vsel %vm386_vm0, %v648_v9, 0.0  ;;  %v245_v30 = vsub.f32 %v1112_v54, %v1169_v29  ;;  %v355_v33 = vld [vmem:[#allocation6 + $0xc] sm:$0x3] }
  0x9e   :  { %v667_v38 = vadd.f32 %v666_v63, %v665_v41  ;;  %v713_v20 = vsel %vm451_vm1, %v662_v50, %v655_v26  ;;  %v680_v13 = vrot.slane %v679_v18, 2  ;;  %v693_v31 = vadd.f32 %v692_v0, %v691_v60 }
  0x9f   :  { %v674_v10 = vadd.f32 %v673_v35, %v672_v24  ;;  %v687_v25 = vrot.slane %v686_v11, 2  ;;  %v699_v51 = vrot.slane %v698_v27, 4  ;;  %v246_v44 = vsub.f32 %v1118_v61, %v1176_v28  ;;  %v349_v61 = vld [vmem:[#allocation6] sm:$0x3]  ;;  %v350_v28 = vld [vmem:[#allocation6 + $0x2] sm:$0x3] }
  0xa0   :  { %v668_v36 = vrot.slane %v667_v38, 1  ;;  %v247_v21 = vsub.f32 %v1122_v16, %v1180_v55  ;;  %v681_v37 = vadd.f32 %v680_v13, %v679_v18  ;;  %v694_v45 = vrot.slane %v693_v31, 2 }
  0xa1   :  { %v675_v1 = vrot.slane %v674_v10, 1  ;;  %v688_v32 = vadd.f32 %v687_v25, %v686_v11  ;;  %v700_v43 = vadd.f32 %v699_v51, %v698_v27  ;;  %v248_v54 = vsub.f32 %v1128_v34, %v1185_v2  ;;  %v352_v34 = vld [vmem:[#allocation6 + $0x6] sm:$0x3] }
  0xa2   :  { %v669_v42 = vadd.f32 %v668_v36, %v667_v38  ;;  %v249_v29 = vsub.f32 %v1134_v14, %v1190_v49  ;;  %v682_v39 = vrot.slane %v681_v37, 1  ;;  %v695_v22 = vadd.f32 %v694_v45, %v693_v31 }
  0xa3   :  { %v676_v19 = vadd.f32 %v675_v1, %v674_v10  ;;  %v689_v3 = vrot.slane %v688_v32, 1  ;;  %v701_v4 = vrot.slane %v700_v43, 2  ;;  %v250_v55 = vsub.f32 %v1140_v17, %v1202_v23 }
  0xa4   :  { %v714_v16 = vsel %vm453_vm2, %v669_v42, %v713_v20  ;;  %v251_v52 = vsub.f32 %v1146_v47, %v1208_v6  ;;  %v683_v2 = vadd.f32 %v682_v39, %v681_v37  ;;  %v696_v14 = vrot.slane %v695_v22, 1 }
  0xa5   :  { %v690_v53 = vadd.f32 %v689_v3, %v688_v32  ;;  %v715_v49 = vsel %vm455_vm3, %v676_v19, %v714_v16  ;;  %v702_v57 = vadd.f32 %v701_v4, %v700_v43  ;;  %v252_v58 = vsub.f32 %v1152_v48, %v1212_v40 }
  0xa6   :  { %v357_v7 = vadd.f32 %v349_v61, %v245_v30  ;;  %v358_v17 = vadd.f32 %v350_v28, %v246_v44  ;;  %v697_v23 = vadd.f32 %v696_v14, %v695_v22  ;;  %v716_v47 = vsel %vm457_vm4, %v683_v2, %v715_v49 }
  0xa7   :  { %v359_v6 = vadd.f32 %v351_v5, %v247_v21  ;;  %v360_v62 = vadd.f32 %v352_v34, %v248_v54  ;;  %v703_v41 = vrot.slane %v702_v57, 1  ;;  %v717_v8 = vsel %vm459_vm5, %v690_v53, %v716_v47 }
  0xa8   :  { %v361_v9 = vadd.f32 %v353_v46, %v249_v29  ;;  %v362_v24 = vadd.f32 %v354_v56, %v250_v55  ;;  %365 = vst [vmem:[#allocation6] sm:$0x3] %v357_v7  ;;  %366 = vst [vmem:[#allocation6 + $0x2] sm:$0x3] %v358_v17  ;;  %v718_v59 = vsel %vm461_vm6, %v697_v23, %v717_v8 }
  0xa9   :  { %v363_v12 = vadd.f32 %v355_v33, %v251_v52  ;;  %v364_v48 = vadd.f32 %v356_v15, %v252_v58  ;;  %367 = vst [vmem:[#allocation6 + $0x4] sm:$0x3] %v359_v6  ;;  %368 = vst [vmem:[#allocation6 + $0x6] sm:$0x3] %v360_v62  ;;  %v704_v40 = vadd.f32 %v703_v41, %v702_v57 }
  0xaa   :  { %369 = vst [vmem:[#allocation6 + $0x8] sm:$0x3] %v361_v9  ;;  %370 = vst [vmem:[#allocation6 + $0xa] sm:$0x3] %v362_v24 }
  0xab   :  { %371 = vst [vmem:[#allocation6 + $0xc] sm:$0x3] %v363_v12  ;;  %372 = vst [vmem:[#allocation6 + $0xe] sm:$0x3] %v364_v48  ;;  %v719_v26 = vsel %vm463_vm7, %v704_v40, %v718_v59 }
  0xac   :  { %721 = vadd.xlane.f32.xlu1 %v719_v26 }
  0xaf   :  { %v726_v50 = vld [vmem:[#allocation6] sm:$0x3]  ;;  %v727_v63 = vld [vmem:[#allocation6 + $0x2] sm:$0x3] }
  0xb0   :  { %v728_v60 = vld [vmem:[#allocation6 + $0x4] sm:$0x3]  ;;  %v729_v35 = vld [vmem:[#allocation6 + $0x6] sm:$0x3]  ;;  %v734_v18 = vsel %vm386_vm0, %v726_v50, 0.0  ;;  %v741_v11 = vsel %vm386_vm0, %v727_v63, 0.0 }
  0xb1   :  { %v730_v0 = vld [vmem:[#allocation6 + $0x8] sm:$0x3]  ;;  %v731_v38 = vld [vmem:[#allocation6 + $0xa] sm:$0x3]  ;;  %v735_v27 = vrot.slane %v734_v18, 4  ;;  %v742_v20 = vrot.slane %v741_v11, 4 }
  0xb2   :  { %v732_v30 = vld [vmem:[#allocation6 + $0xc] sm:$0x3]  ;;  %v733_v10 = vld [vmem:[#allocation6 + $0xe] sm:$0x3]  ;;  %v748_v13 = vsel %vm386_vm0, %v728_v60, 0.0  ;;  %v755_v25 = vsel %vm386_vm0, %v729_v35, 0.0 }
  0xb3   :  { %v736_v31 = vadd.f32 %v735_v27, %v734_v18  ;;  %v743_v36 = vadd.f32 %v742_v20, %v741_v11  ;;  %v749_v51 = vrot.slane %v748_v13, 4  ;;  %v756_v44 = vrot.slane %v755_v25, 4 }
  0xb4   :  { %v762_v21 = vsel %vm386_vm0, %v730_v0, 0.0  ;;  %v769_v1 = vsel %vm386_vm0, %v731_v38, 0.0  ;;  %v776_v37 = vsel %vm386_vm0, %v732_v30, 0.0  ;;  %v783_v32 = vsel %vm386_vm0, %v733_v10, 0.0 }
  0xb5   :  { %v737_v45 = vrot.slane %v736_v31, 2  ;;  %v744_v42 = vrot.slane %v743_v36, 2  ;;  %v750_v43 = vadd.f32 %v749_v51, %v748_v13  ;;  %v757_v54 = vadd.f32 %v756_v44, %v755_v25 }
  0xb6   :  { %v763_v29 = vrot.slane %v762_v21, 4  ;;  %v770_v19 = vrot.slane %v769_v1, 4  ;;  %v777_v39 = vrot.slane %v776_v37, 4  ;;  %v784_v3 = vrot.slane %v783_v32, 4 }
  0xb7   :  { %v738_v22 = vadd.f32 %v737_v45, %v736_v31  ;;  %v745_v61 = vadd.f32 %v744_v42, %v743_v36  ;;  %v751_v28 = vrot.slane %v750_v43, 2  ;;  %v758_v4 = vrot.slane %v757_v54, 2 }
  0xb8   :  { %v764_v16 = vadd.f32 %v763_v29, %v762_v21  ;;  %v771_v55 = vadd.f32 %v770_v19, %v769_v1  ;;  %v778_v52 = vadd.f32 %v777_v39, %v776_v37  ;;  %v785_v5 = vadd.f32 %v784_v3, %v783_v32 }
  0xb9   :  { %v739_v34 = vrot.slane %v738_v22, 1  ;;  %v746_v2 = vrot.slane %v745_v61, 1  ;;  %v752_v53 = vadd.f32 %v751_v28, %v750_v43  ;;  %v759_v14 = vadd.f32 %v758_v4, %v757_v54 }
  0xba   :  { %v765_v49 = vrot.slane %v764_v16, 2  ;;  %v772_v46 = vrot.slane %v771_v55, 2  ;;  %v779_v56 = vrot.slane %v778_v52, 2  ;;  %v786_v57 = vrot.slane %v785_v5, 2 }
  0xbb   :  { %v740_v58 = vadd.f32 %v739_v34, %v738_v22  ;;  %v747_v33 = vadd.f32 %v746_v2, %v745_v61  ;;  %v753_v15 = vrot.slane %v752_v53, 1  ;;  %v760_v7 = vrot.slane %v759_v14, 1 }
  0xbc   :  { %v766_v17 = vadd.f32 %v765_v49, %v764_v16  ;;  %v773_v23 = vadd.f32 %v772_v46, %v771_v55  ;;  %v780_v47 = vadd.f32 %v779_v56, %v778_v52  ;;  %v787_v6 = vadd.f32 %v786_v57, %v785_v5 }
  0xbd   :  { %v754_v62 = vadd.f32 %v753_v15, %v752_v53  ;;  %v761_v41 = vadd.f32 %v760_v7, %v759_v14  ;;  %v798_v8 = vsel %vm451_vm1, %v747_v33, %v740_v58  ;;  %v376_v38 = vlaneseq }
  0xbe   :  { %v767_v9 = vrot.slane %v766_v17, 1  ;;  %v774_v24 = vrot.slane %v773_v23, 1  ;;  %v781_v59 = vrot.slane %v780_v47, 1  ;;  %v788_v12 = vrot.slane %v787_v6, 1 }
  0xbf   :  { %v799_v48 = vsel %vm453_vm2, %v754_v62, %v798_v8  ;;  %v377_v20 = vand.u32 127, %v376_v38 }
  0xc0   :  { %v768_v40 = vadd.f32 %v767_v9, %v766_v17  ;;  %v775_v26 = vadd.f32 %v774_v24, %v773_v23  ;;  %v782_v50 = vadd.f32 %v781_v59, %v780_v47  ;;  %v789_v63 = vadd.f32 %v788_v12, %v787_v6 }
  0xc1   :  { %v800_v60 = vsel %vm455_vm3, %v761_v41, %v799_v48  ;;  %vm553_vm8 = vcmp.eq.s32.totalorder %v377_v20, 1  ;;  %vm468_vm9 = vcmp.eq.s32.totalorder %v377_v20, 0  ;;  %vm638_vm10 = vcmp.eq.s32.totalorder %v377_v20, 2 }
  0xc2   :  { %v801_v35 = vsel %vm457_vm4, %v768_v40, %v800_v60  ;;  %vm723_vm11 = vcmp.eq.s32.totalorder %v377_v20, 3  ;;  %vm808_vm12 = vcmp.eq.s32.totalorder %v377_v20, 4 }
  0xc3   :  { %v802_v18 = vsel %vm459_vm5, %v775_v26, %v801_v35 }
  0xc4   :  { %v803_v11 = vsel %vm461_vm6, %v782_v50, %v802_v18 }
  0xc5   :  { %v804_v0 = vsel %vm463_vm7, %v789_v63, %v803_v11 }
  0xc6   :  { %806 = vadd.xlane.f32.xlu0 %v804_v0 }
  0xfe   :  { %v637_v10 = vpop.xlane.xlu1 %636 }
  0xff   :  { %v639_v51 = vsel %vm638_vm10, %v637_v10, 0.0 }
 0x11a   :  { %v467_v27 = vpop.xlane.xlu0 %466 }
 0x11b   :  { %v469_v25 = vsel %vm468_vm9, %v467_v27, 0.0 }
 0x128   :  { %v552_v30 = vpop.xlane.xlu0 %551 }
 0x129   :  { %v554_v13 = vsel %vm553_vm8, %v552_v30, 0.0 }
 0x12a   :  { %v555_v31 = vadd.f32 %v554_v13, %v469_v25 }
 0x12c   :  { %v640_v44 = vadd.f32 %v639_v51, %v555_v31 }
 0x139   :  { %v722_v36 = vpop.xlane.xlu1 %721 }
 0x13a   :  { %v724_v21 = vsel %vm723_vm11, %v722_v36, 0.0 }
 0x13b   :  { %v725_v1 = vadd.f32 %v724_v21, %v640_v44 }
 0x153   :  { %v807_v37 = vpop.xlane.xlu0 %806 }
 0x154   :  { %v809_v32 = vsel %vm808_vm12, %v807_v37, 0.0 }
 0x155   :  { %v810_v45 = vadd.f32 %v809_v32, %v725_v1 }
 0x157   :  { %811 = vst [vmem:[#allocation12] sm:$0xff] %v810_v45 }
 0x158   :  { %944 = shalt.err (!%p941_p6)
}
 0x159   :  { %s945_s10 = scalar_lea.hbm %s1331_s2, 128 }
 0x15a   :  { %p946_p7 = scmp.ne.s32.totalorder %s1331_s2, %s945_s10  ;;  %p949_p8 = scmp.lt.u32.totalorder %s945_s10, %s1331_s2 }
 0x15c   :  { %p951_p9 = pnand %p949_p8, %p946_p7 }
 0x15e   :  { %954 = shalt.err (!%p951_p9)
}
 0x15f   :  { %824 = dma.vmem_to_hbm [thread:$0]  %s822_s6, 128, %s1331_s2, [#allocation9]  }
 0x160   :  { %959 = dma.done.wait [#allocation9], 128  }
 0x161   :  { %960 = vsyncadd [#allocation9], 4294967168 }
 0x162   :  { %828 = vsyncpa [#allocation8], 1 }
 0x163   :  { %829 = vsyncpa [#allocation11], 1 }
 0x164   :  { %830 = vsyncpa [#allocation9], 1 }

</bundles_post_ra>
